<compile_context>
chip_gen: v6e
topology: v6e:2x2x1
jax: 0.10.0
libtpu: 0.0.40
codegen_flags: <defaults>
</compile_context>

<pallas_src>
import functools

import jax
import jax.numpy as jnp
from jax.experimental import pallas as pl
from jax.experimental.pallas import tpu as pltpu


def linear_attention_kernel(x_ref, wqkv_ref, wout_ref, mask_ref, bout_ref,
                            gamma_ref, beta_ref, o_ref, *, num_heads, dim_head,
                            eps, compute_dtype):
    hidden = num_heads * dim_head

    x = x_ref[0]                 # (C, N), compute_dtype (pre-cast in wrapper)
    wqkv = wqkv_ref[...]         # (3*hidden, C), compute_dtype
    mask = mask_ref[...]         # (hidden, hidden) 0/1 block-diag, compute_dtype

    # input_to_qkv: 1x1 conv (no bias) == (3*hidden, C) @ (C, N), f32 accumulate.
    qkv = jnp.dot(wqkv, x, preferred_element_type=jnp.float32)   # (3*hidden, N)

    q = qkv[:hidden]             # (hidden, N)  -- static sublane slices
    k = qkv[hidden:2 * hidden]   # (hidden, N)
    v = qkv[2 * hidden:]         # (hidden, N)

    # --- q softmax over dim_head (sublane groups), fused across heads -------
    # Subtract the per-lane global max (same constant for every row within a
    # head, so each per-head softmax is unchanged), then get the per-head sums
    # with one block-indicator matmul on the MXU.
    q_max = jnp.max(q, axis=0, keepdims=True)                    # (1, N)
    q_exp = jnp.exp(q - q_max)                                   # (hidden, N) f32
    q_exp_cd = q_exp.astype(compute_dtype)
    seg_sum = jnp.dot(mask, q_exp_cd,
                      preferred_element_type=jnp.float32)        # (hidden, N)
    # NOTE: scale factor folded into wout (see wrapper), so no * scale here.
    q_soft = q_exp * pl.reciprocal(seg_sum, approx=True)

    # --- k softmax over N (lanes); rows are independent -> per-head correct --
    k_max = jnp.max(k, axis=-1, keepdims=True)
    k_exp = jnp.exp(k - k_max)
    k_sum = jnp.sum(k_exp, axis=-1, keepdims=True)
    k_soft = k_exp * pl.reciprocal(k_sum, approx=True)

    # --- fused per-head attention via block-diagonal (hidden,hidden) matmuls --
    # ctx_t[e, d] = sum_n v[e, n] * k[d, n]   (== context[d, e] of the reference)
    ctx_t = jax.lax.dot_general(
        v.astype(compute_dtype), k_soft.astype(compute_dtype),
        dimension_numbers=(((1,), (1,)), ((), ())),
        preferred_element_type=jnp.float32)                      # (hidden, hidden)
    ctx_t = ctx_t * mask                                         # keep per-head blocks

    # attn[e, n] = sum_d context[d, e] * q[d, n]
    attn = jnp.dot(ctx_t.astype(compute_dtype), q_soft.astype(compute_dtype),
                   preferred_element_type=jnp.float32)           # (hidden, N)

    # to_output[0]: 1x1 conv with bias == (C, hidden*scale) @ (hidden, N) + b
    proj = jnp.dot(wout_ref[...], attn.astype(compute_dtype),
                   preferred_element_type=jnp.float32) + bout_ref[...]   # (C, N)

    # to_output[1]: GroupNorm(1, C) -> normalize over the whole (C, N) sample.
    mean = jnp.mean(proj)
    var = jnp.mean(jnp.square(proj - mean))
    normed = (proj - mean) * jax.lax.rsqrt(var + eps)
    out = normed * gamma_ref[...] + beta_ref[...]

    o_ref[0] = out.astype(o_ref.dtype)


def linear_attention(x_nchw, wqkv, wout, bout, gamma, beta, *,
                     num_heads, dim_head, compute_dtype=jnp.bfloat16):
    b, c, h, w = x_nchw.shape
    n = h * w
    hidden = num_heads * dim_head
    scale = 1.0 / (dim_head ** 0.5)

    # NCHW -> (B, C, N): pure reshape, no transpose (channels-on-sublanes layout).
    x_in = x_nchw.reshape(b, c, n).astype(compute_dtype)
    wqkv_in = wqkv.astype(compute_dtype)                 # (3*hidden, C)
    # Fold the attention scale into the (tiny, DMA'd-once) output weight.
    wout_in = (wout * scale).astype(compute_dtype)       # (C, hidden)
    bout_in = bout.reshape(c, 1).astype(jnp.float32)
    gamma_in = gamma.reshape(c, 1).astype(jnp.float32)
    beta_in = beta.reshape(c, 1).astype(jnp.float32)

    # Block-diagonal head indicator, built once in the wrapper (hoisted constant).
    head_ids = jnp.arange(hidden) // dim_head
    mask_in = (head_ids[:, None] == head_ids[None, :]).astype(compute_dtype)

    kernel = functools.partial(linear_attention_kernel, num_heads=num_heads,
                               dim_head=dim_head, eps=1e-5,
                               compute_dtype=compute_dtype)

    inputs = (x_in, wqkv_in, wout_in, mask_in, bout_in, gamma_in, beta_in)
    flops = 2 * b * n * (4 * hidden * c + 3 * hidden * hidden)
    bytes_accessed = (sum(a.size * a.dtype.itemsize for a in inputs)
                      + b * c * n * x_nchw.dtype.itemsize)
    cost = pl.CostEstimate(flops=flops, transcendentals=3 * b * hidden * n,
                           bytes_accessed=bytes_accessed)

    # TODO(synk): for very large diffusion shapes (C*N big enough to stress
    # v7x's 64 MiB VMEM) add an N-tiling grid axis with online k-softmax /
    # context / GroupNorm accumulators; a single (C, N) tile per batch element
    # is optimal for the shapes this module is used at.
    out_cn = pl.pallas_call(
        kernel,
        out_shape=jax.ShapeDtypeStruct((b, c, n), x_nchw.dtype),
        grid_spec=pltpu.PrefetchScalarGridSpec(
            num_scalar_prefetch=0,
            grid=(b,),
            in_specs=[
                pl.BlockSpec((1, c, n), lambda i: (i, 0, 0)),       # x (B, C, N)
                pl.BlockSpec((3 * hidden, c), lambda i: (0, 0)),    # qkv weight
                pl.BlockSpec((c, hidden), lambda i: (0, 0)),        # out-proj weight
                pl.BlockSpec((hidden, hidden), lambda i: (0, 0)),   # head block mask
                pl.BlockSpec((c, 1), lambda i: (0, 0)),             # out-proj bias
                pl.BlockSpec((c, 1), lambda i: (0, 0)),             # GN gamma
                pl.BlockSpec((c, 1), lambda i: (0, 0)),             # GN beta
            ],
            out_specs=pl.BlockSpec((1, c, n), lambda i: (i, 0, 0)),
        ),
        compiler_params=pltpu.CompilerParams(
            dimension_semantics=("parallel",),          # batch axis -> v7x 2 TCs
            vmem_limit_bytes=32 * 1024 * 1024),
        cost_estimate=cost,
    )(*inputs)

    # (B, C, N) -> NCHW: pure reshape, no transpose.
    return out_cn.reshape(b, c, h, w)


def linear_attention_reference(x, wqkv, wout, bout, gamma, beta, *,
                               num_heads, dim_head):
    """Pure-JAX f32 reference mirroring the PyTorch forward exactly (NCHW)."""
    hp = jax.lax.Precision.HIGHEST
    b, c, h, w = x.shape
    hidden = num_heads * dim_head
    scale = 1.0 / (dim_head ** 0.5)

    qkv = jnp.einsum('bchw,oc->bohw', x, wqkv, precision=hp)   # (B, 3*hidden, H, W)
    qkv = qkv.reshape(b, 3, num_heads, dim_head, h * w)
    q, k, v = qkv[:, 0], qkv[:, 1], qkv[:, 2]                  # (B, Hh, D, N)

    q = jax.nn.softmax(q, axis=-2) * scale
    k = jax.nn.softmax(k, axis=-1)

    ctx = jnp.einsum('bhdn,bhen->bhde', k, v, precision=hp)
    out = jnp.einsum('bhde,bhdn->bhen', ctx, q, precision=hp)
    out = out.reshape(b, hidden, h, w)

    out = jnp.einsum('bchw,oc->bohw', out, wout, precision=hp) + bout[None, :, None, None]
    mean = out.mean(axis=(1, 2, 3), keepdims=True)
    var = ((out - mean) ** 2).mean(axis=(1, 2, 3), keepdims=True)
    normed = (out - mean) / jnp.sqrt(var + 1e-5)
    return normed * gamma[None, :, None, None] + beta[None, :, None, None]


if __name__ == "__main__":
    B, C, H, W = 2, 4, 16, 16
    NUM_HEADS, DIM_HEAD = 4, 32
    HIDDEN = NUM_HEADS * DIM_HEAD

    key = jax.random.PRNGKey(0)
    kx, kw1, kw2, kb = jax.random.split(key, 4)

    x = jax.random.normal(kx, (B, C, H, W), jnp.float32)
    # Conv2d(in_channels, 3*hidden, 1, bias=False) weight: (3*hidden, C)
    w_qkv = jax.random.normal(kw1, (3 * HIDDEN, C), jnp.float32) * 0.1
    # Conv2d(hidden, in_channels, 1) weight/bias
    w_out = jax.random.normal(kw2, (C, HIDDEN), jnp.float32) * 0.1
    b_out = jax.random.normal(kb, (C,), jnp.float32) * 0.1
    # GroupNorm(1, C) default affine init
    gn_weight = jnp.ones((C,), jnp.float32)
    gn_bias = jnp.zeros((C,), jnp.float32)

    ref = linear_attention_reference(x, w_qkv, w_out, b_out, gn_weight, gn_bias,
                                     num_heads=NUM_HEADS, dim_head=DIM_HEAD)

    # 1) f32 MXU-operand path: tight check of the fused block-diagonal math.
    out_f32 = linear_attention(x, w_qkv, w_out, b_out, gn_weight, gn_bias,
                               num_heads=NUM_HEADS, dim_head=DIM_HEAD,
                               compute_dtype=jnp.float32)
    out_f32 = jax.block_until_ready(out_f32)
    assert out_f32.shape == (B, C, H, W), out_f32.shape
    assert jnp.allclose(out_f32, ref, atol=2e-3, rtol=2e-3), (
        float(jnp.max(jnp.abs(out_f32 - ref))))

    # 2) bf16 MXU-operand path (default; recommended on v5e/v6e/v7x).
    out_bf16 = linear_attention(x, w_qkv, w_out, b_out, gn_weight, gn_bias,
                                num_heads=NUM_HEADS, dim_head=DIM_HEAD,
                                compute_dtype=jnp.bfloat16)
    out_bf16 = jax.block_until_ready(out_bf16)
    assert out_bf16.shape == (B, C, H, W), out_bf16.shape
    assert jnp.allclose(out_bf16, ref, atol=5e-2, rtol=5e-2), (
        float(jnp.max(jnp.abs(out_bf16 - ref))))

    print("KERNEL_OK")
</pallas_src>

<mosaic_0001>
module attributes {stable_mosaic.version = 11 : i64} {
  func.func @linear_attention_kernel(%arg0: i32, %arg1: memref<1x4x256xf32, #tpu.memory_space<vmem>>, %arg2: memref<384x4xf32, #tpu.memory_space<vmem>>, %arg3: memref<4x128xf32, #tpu.memory_space<vmem>>, %arg4: memref<128x128xf32, #tpu.memory_space<vmem>>, %arg5: memref<4x1xf32, #tpu.memory_space<vmem>>, %arg6: memref<4x1xf32, #tpu.memory_space<vmem>>, %arg7: memref<4x1xf32, #tpu.memory_space<vmem>>, %arg8: memref<1x4x256xf32, #tpu.memory_space<vmem>>) attributes {dimension_semantics = [#tpu.dimension_semantics<parallel>], iteration_bounds = array<i64: 2>, scalar_prefetch = 0 : i64, scratch_operands = 0 : i64, tpu.core_type = #tpu.core_type<tc>, window_params = [{transform_indices = @transform_0, window_bounds = array<i64: 1, 4, 256>}, {pipeline_mode = #tpu.pipeline_mode<synchronous>, transform_indices = @transform_1, window_bounds = array<i64: 384, 4>}, {pipeline_mode = #tpu.pipeline_mode<synchronous>, transform_indices = @transform_2, window_bounds = array<i64: 4, 128>}, {pipeline_mode = #tpu.pipeline_mode<synchronous>, transform_indices = @transform_3, window_bounds = array<i64: 128, 128>}, {pipeline_mode = #tpu.pipeline_mode<synchronous>, transform_indices = @transform_4, window_bounds = array<i64: 4, 1>}, {pipeline_mode = #tpu.pipeline_mode<synchronous>, transform_indices = @transform_5, window_bounds = array<i64: 4, 1>}, {pipeline_mode = #tpu.pipeline_mode<synchronous>, transform_indices = @transform_6, window_bounds = array<i64: 4, 1>}, {transform_indices = @transform_7, window_bounds = array<i64: 1, 4, 256>}]} {
    %c0 = arith.constant 0 : index
    %c0_0 = arith.constant 0 : index
    %c0_1 = arith.constant 0 : index
    %0 = vector.load %arg1[%c0, %c0_0, %c0_1] : memref<1x4x256xf32, #tpu.memory_space<vmem>>, vector<1x4x256xf32>
    %1 = vector.shape_cast %0 : vector<1x4x256xf32> to vector<4x256xf32>
    %c0_2 = arith.constant 0 : index
    %c0_3 = arith.constant 0 : index
    %2 = vector.load %arg2[%c0_2, %c0_3] : memref<384x4xf32, #tpu.memory_space<vmem>>, vector<384x4xf32>
    %c0_4 = arith.constant 0 : index
    %c0_5 = arith.constant 0 : index
    %3 = vector.load %arg4[%c0_4, %c0_5] : memref<128x128xf32, #tpu.memory_space<vmem>>, vector<128x128xf32>
    %cst = arith.constant dense<0.000000e+00> : vector<384x256xf32>
    %4 = tpu.matmul %2, %1, %cst {dimension_numbers = #tpu.dot_dimension_numbers<[1], [0], [0], [1], [0, 0, 1, 1], [], []>} : vector<384x4xf32>, vector<4x256xf32>, vector<384x256xf32> -> vector<384x256xf32>
    %5 = vector.extract_strided_slice %4 {offsets = [0, 0], sizes = [128, 256], strides = [1, 1]} : vector<384x256xf32> to vector<128x256xf32>
    %6 = vector.extract_strided_slice %4 {offsets = [128, 0], sizes = [128, 256], strides = [1, 1]} : vector<384x256xf32> to vector<128x256xf32>
    %7 = vector.extract_strided_slice %4 {offsets = [256, 0], sizes = [128, 256], strides = [1, 1]} : vector<384x256xf32> to vector<128x256xf32>
    %cst_6 = arith.constant dense<0xFF800000> : vector<256xf32>
    %8 = vector.multi_reduction <maximumf>, %5, %cst_6 [0] : vector<128x256xf32> to vector<256xf32>
    %9 = vector.shape_cast %8 : vector<256xf32> to vector<1x256xf32>
    %10 = vector.broadcast %9 : vector<1x256xf32> to vector<128x256xf32>
    %11 = arith.subf %5, %10 : vector<128x256xf32>
    %12 = math.exp %11 : vector<128x256xf32>
    %cst_7 = arith.constant dense<0.000000e+00> : vector<128x256xf32>
    %13 = tpu.matmul %3, %12, %cst_7 {dimension_numbers = #tpu.dot_dimension_numbers<[1], [0], [0], [1], [0, 0, 1, 1], [], []>} : vector<128x128xf32>, vector<128x256xf32>, vector<128x256xf32> -> vector<128x256xf32>
    %14 = tpu.reciprocal %13 {approx = true} : vector<128x256xf32> -> vector<128x256xf32>
    %15 = arith.mulf %12, %14 : vector<128x256xf32>
    %cst_8 = arith.constant dense<0xFF800000> : vector<128xf32>
    %16 = vector.multi_reduction <maximumf>, %6, %cst_8 [1] : vector<128x256xf32> to vector<128xf32>
    %17 = vector.shape_cast %16 : vector<128xf32> to vector<128x1xf32>
    %18 = vector.broadcast %17 : vector<128x1xf32> to vector<128x256xf32>
    %19 = arith.subf %6, %18 : vector<128x256xf32>
    %20 = math.exp %19 : vector<128x256xf32>
    %cst_9 = arith.constant dense<0.000000e+00> : vector<128xf32>
    %21 = vector.multi_reduction <add>, %20, %cst_9 [1] : vector<128x256xf32> to vector<128xf32>
    %22 = vector.shape_cast %21 : vector<128xf32> to vector<128x1xf32>
    %23 = tpu.reciprocal %22 {approx = true} : vector<128x1xf32> -> vector<128x1xf32>
    %24 = vector.broadcast %23 : vector<128x1xf32> to vector<128x256xf32>
    %25 = arith.mulf %20, %24 : vector<128x256xf32>
    %cst_10 = arith.constant dense<0.000000e+00> : vector<128x128xf32>
    %26 = tpu.matmul %7, %25, %cst_10 {dimension_numbers = #tpu.dot_dimension_numbers<[1], [1], [0], [0], [0, 0, 1, 0], [], []>} : vector<128x256xf32>, vector<128x256xf32>, vector<128x128xf32> -> vector<128x128xf32>
    %27 = arith.mulf %26, %3 : vector<128x128xf32>
    %cst_11 = arith.constant dense<0.000000e+00> : vector<128x256xf32>
    %28 = tpu.matmul %27, %15, %cst_11 {dimension_numbers = #tpu.dot_dimension_numbers<[1], [0], [0], [1], [0, 0, 1, 1], [], []>} : vector<128x128xf32>, vector<128x256xf32>, vector<128x256xf32> -> vector<128x256xf32>
    %c0_12 = arith.constant 0 : index
    %c0_13 = arith.constant 0 : index
    %29 = vector.load %arg3[%c0_12, %c0_13] : memref<4x128xf32, #tpu.memory_space<vmem>>, vector<4x128xf32>
    %cst_14 = arith.constant dense<0.000000e+00> : vector<4x256xf32>
    %30 = tpu.matmul %29, %28, %cst_14 {dimension_numbers = #tpu.dot_dimension_numbers<[1], [0], [0], [1], [0, 0, 1, 1], [], []>} : vector<4x128xf32>, vector<128x256xf32>, vector<4x256xf32> -> vector<4x256xf32>
    %c0_15 = arith.constant 0 : index
    %c0_16 = arith.constant 0 : index
    %31 = vector.load %arg5[%c0_15, %c0_16] : memref<4x1xf32, #tpu.memory_space<vmem>>, vector<4x1xf32>
    %32 = vector.broadcast %31 : vector<4x1xf32> to vector<4x256xf32>
    %33 = arith.addf %30, %32 : vector<4x256xf32>
    %34 = vector.shape_cast %33 : vector<4x256xf32> to vector<1x4x256xf32>
    %cst_17 = arith.constant dense<0.000000e+00> : vector<1xf32>
    %35 = vector.multi_reduction <add>, %34, %cst_17 [1, 2] : vector<1x4x256xf32> to vector<1xf32>
    %36 = vector.shape_cast %35 : vector<1xf32> to vector<1x1x1xf32>
    %37 = vector.extract %36[0, 0, 0] : f32 from vector<1x1x1xf32>
    %cst_18 = arith.constant 1.024000e+03 : f32
    %38 = arith.divf %37, %cst_18 : f32
    %39 = vector.broadcast %38 : f32 to vector<4x256xf32>
    %40 = arith.subf %33, %39 : vector<4x256xf32>
    %41 = arith.mulf %40, %40 : vector<4x256xf32>
    %42 = vector.shape_cast %41 : vector<4x256xf32> to vector<1x4x256xf32>
    %cst_19 = arith.constant dense<0.000000e+00> : vector<1xf32>
    %43 = vector.multi_reduction <add>, %42, %cst_19 [1, 2] : vector<1x4x256xf32> to vector<1xf32>
    %44 = vector.shape_cast %43 : vector<1xf32> to vector<1x1x1xf32>
    %45 = vector.extract %44[0, 0, 0] : f32 from vector<1x1x1xf32>
    %cst_20 = arith.constant 1.024000e+03 : f32
    %46 = arith.divf %45, %cst_20 : f32
    %47 = vector.broadcast %38 : f32 to vector<4x256xf32>
    %48 = arith.subf %33, %47 : vector<4x256xf32>
    %cst_21 = arith.constant 9.99999974E-6 : f32
    %49 = arith.addf %46, %cst_21 : f32
    %50 = math.rsqrt %49 : f32
    %51 = vector.broadcast %50 : f32 to vector<4x256xf32>
    %52 = arith.mulf %48, %51 : vector<4x256xf32>
    %c0_22 = arith.constant 0 : index
    %c0_23 = arith.constant 0 : index
    %53 = vector.load %arg6[%c0_22, %c0_23] : memref<4x1xf32, #tpu.memory_space<vmem>>, vector<4x1xf32>
    %54 = vector.broadcast %53 : vector<4x1xf32> to vector<4x256xf32>
    %55 = arith.mulf %52, %54 : vector<4x256xf32>
    %c0_24 = arith.constant 0 : index
    %c0_25 = arith.constant 0 : index
    %56 = vector.load %arg7[%c0_24, %c0_25] : memref<4x1xf32, #tpu.memory_space<vmem>>, vector<4x1xf32>
    %57 = vector.broadcast %56 : vector<4x1xf32> to vector<4x256xf32>
    %58 = arith.addf %55, %57 : vector<4x256xf32>
    %c0_26 = arith.constant 0 : index
    %c0_27 = arith.constant 0 : index
    %c0_28 = arith.constant 0 : index
    %59 = vector.load %arg8[%c0_26, %c0_27, %c0_28] : memref<1x4x256xf32, #tpu.memory_space<vmem>>, vector<1x4x256xf32>
    %60 = vector.shape_cast %59 : vector<1x4x256xf32> to vector<4x256xf32>
    %61 = vector.shape_cast %58 : vector<4x256xf32> to vector<1x4x256xf32>
    tpu.vector_store %arg8[%c0_26, %c0_27, %c0_28], %61 {strides = array<i32>} : memref<1x4x256xf32, #tpu.memory_space<vmem>>, vector<1x4x256xf32>,
    return
  }
  func.func @transform_0(%arg0: i32) -> (i32, i32, i32) {
    %c0_i32 = arith.constant 0 : i32
    %c0_i32_0 = arith.constant 0 : i32
    %c0_i32_1 = arith.constant 0 : i32
    return %arg0, %c0_i32, %c0_i32_0 : i32, i32, i32
  }
  func.func @transform_1(%arg0: i32) -> (i32, i32) {
    %c0_i32 = arith.constant 0 : i32
    %c0_i32_0 = arith.constant 0 : i32
    %c0_i32_1 = arith.constant 0 : i32
    return %c0_i32, %c0_i32_0 : i32, i32
  }
  func.func @transform_2(%arg0: i32) -> (i32, i32) {
    %c0_i32 = arith.constant 0 : i32
    %c0_i32_0 = arith.constant 0 : i32
    %c0_i32_1 = arith.constant 0 : i32
    return %c0_i32, %c0_i32_0 : i32, i32
  }
  func.func @transform_3(%arg0: i32) -> (i32, i32) {
    %c0_i32 = arith.constant 0 : i32
    %c0_i32_0 = arith.constant 0 : i32
    %c0_i32_1 = arith.constant 0 : i32
    return %c0_i32, %c0_i32_0 : i32, i32
  }
  func.func @transform_4(%arg0: i32) -> (i32, i32) {
    %c0_i32 = arith.constant 0 : i32
    %c0_i32_0 = arith.constant 0 : i32
    %c0_i32_1 = arith.constant 0 : i32
    return %c0_i32, %c0_i32_0 : i32, i32
  }
  func.func @transform_5(%arg0: i32) -> (i32, i32) {
    %c0_i32 = arith.constant 0 : i32
    %c0_i32_0 = arith.constant 0 : i32
    %c0_i32_1 = arith.constant 0 : i32
    return %c0_i32, %c0_i32_0 : i32, i32
  }
  func.func @transform_6(%arg0: i32) -> (i32, i32) {
    %c0_i32 = arith.constant 0 : i32
    %c0_i32_0 = arith.constant 0 : i32
    %c0_i32_1 = arith.constant 0 : i32
    return %c0_i32, %c0_i32_0 : i32, i32
  }
  func.func @transform_7(%arg0: i32) -> (i32, i32, i32) {
    %c0_i32 = arith.constant 0 : i32
    %c0_i32_0 = arith.constant 0 : i32
    %c0_i32_1 = arith.constant 0 : i32
    return %arg0, %c0_i32, %c0_i32_0 : i32, i32, i32
  }
}

</mosaic_0001>

<bundles_post_ra>
// kernel: tpu_custom_call.1
= control target key start
LH: loop header
LB: loop body
LE: loop exit
PB: predicated region body
PF: predicated region fallthrough
CT: control target
= control target key end

     0   :  { %12 = vsyncpa [#allocation3], 0  ;;  %s3594_s0 = inlined_call_operand.vmem [shape: f32[2,4,256], index: 0, kind: input, shape index: {}]   ;;  %s3595_s1 = inlined_call_operand.vmem [shape: f32[384,4], index: 1, kind: input, shape index: {}]   ;;  %s3596_s2 = inlined_call_operand.vmem [shape: f32[4,128], index: 2, kind: input, shape index: {}]   ;;  %s3597_s3 = inlined_call_operand.vmem [shape: f32[128,128], index: 3, kind: input, shape index: {}]   ;;  %s3598_s4 = inlined_call_operand.vmem [shape: f32[4,1], index: 4, kind: input, shape index: {}]   ;;  %s3599_s5 = inlined_call_operand.vmem [shape: f32[4,1], index: 5, kind: input, shape index: {}]   ;;  %s3600_s6 = inlined_call_operand.vmem [shape: f32[4,1], index: 6, kind: input, shape index: {}]   ;;  %s3601_s7 = inlined_call_operand.hbm [shape: f32[2,4,256], index: 7, kind: output, shape index: {}]  }
   0x1   :  { %14 = vsyncpa [#allocation3 + $0x1], 0  ;;  %s2448_s24 = smov 0   ;;  %s2450_s25 = smov 0  }
   0x2   :  { %s2452_s26 = smov 0   ;;  %s2454_s27 = smov 0  }
   0x3 LB: > { %s2469_s28 = sadd.s32 4294967295, %s2403_s27   ;;  %s1987_s29 = sadd.s32 4294967294, %s2403_s27   ;;  %s2403_s27 = sphi %s2454_s27, %s3707_s27   ;;  %s2399_s26 = sphi %s2452_s26, %s3706_s26   ;;  %s2395_s25 = sphi %s2450_s25, %s3705_s25   ;;  %s2391_s24 = sphi %s2448_s24, %s3704_s24  }
   0x4   : > { %s2473_s30 = sadd.s32 1, %s2403_s27   ;;  %s179_s8 = sadd.s32 1, %s2399_s26 }
   0x5   : > { %s176_s9 = ssub.s32 %s2403_s27, %s2473_s30  ;;  %p189_p0 = scmp.ne.s32.totalorder %s2399_s26, %s2395_s25 }
   0x6   : > { %p177_p1 = scmp.eq.s32.totalorder %s176_s9, 0  ;;  %p190_p2 = scmp.eq.s32.totalorder %s2469_s28, 1 }
   0x7   : > { %p195_p3 = scmp.ne.s32.totalorder %s2395_s25, %s2391_s24  ;;  %p196_p4 = scmp.eq.s32.totalorder %s1987_s29, 1 }
   0x8   : > { %s2484_s10 = scalar_select %p177_p1, %s2399_s26, %s179_s8  }
   0x9   : > { %p2486_p5 = por %p190_p2, %p189_p0  ;;  %p2490_p6 = por %p196_p4, %p195_p3 }
   0xa   : > { %p1990_p7 = scmp.ge.s32.totalorder %s2403_s27, 1  ;;  %p240_p8 = scmp.lt.s32.totalorder %s2403_s27, 3 }
   0xc   : > { %p241_p9 = pnand %p1990_p7, %p240_p8 }
   0xe   : > { %244 = sbr.rel (%p241_p9) target bundleno = 1912 (0x778), region = 48 }
  0x13   : > { %p272_p10 = scmp.lt.s32.totalorder %s2469_s28, 1  ;;  %v3602_v0 = vmov 0.0   ;;  %vm489_vm0 = vcmask 1043456   ;;  %v278_v3 = vld [vmem:[%s3595_s1] sm:$0xff]  ;;  %vm344_vm1 = vcmask 31744   ;;  %v279_v4 = vld [vmem:[%s3595_s1 + $0x8] sm:$0xff] }
  0x14   : > { %558 = vmatprep.mubr.f32.mxu0 %v3602_v0  ;;  %1049 = vmatprep.mubr.f32.mxu1 %v3602_v0  ;;  %v280_v5 = vld [vmem:[%s3595_s1 + $0x10] sm:$0xff]  ;;  %v281_v6 = vld [vmem:[%s3595_s1 + $0x18] sm:$0xff]  ;;  %v282_v7 = vld [vmem:[%s3595_s1 + $0x20] sm:$0xff]  ;;  %s269_s23 = sand.u32 1, %s2395_s25   ;;  %s2050_s9 = sshll.u32 %s2469_s28, 7 }
  0x15   : > { %s273_s13 = scalar_select %p272_p10, %s2469_s28, 1  ;;  %v283_v8 = vld [vmem:[%s3595_s1 + $0x28] sm:$0xff]  ;;  %v284_v9 = vld [vmem:[%s3595_s1 + $0x30] sm:$0xff]  ;;  %v285_v10 = vld [vmem:[%s3595_s1 + $0x38] sm:$0xff] }
  0x16   : > { %v286_v11 = vld [vmem:[%s3595_s1 + $0x40] sm:$0xff]  ;;  %v287_v12 = vld [vmem:[%s3595_s1 + $0x48] sm:$0xff]  ;;  %v288_v13 = vld [vmem:[%s3595_s1 + $0x50] sm:$0xff]  ;;  %s1991_s29 = sshll.u32 %s269_s23, 3  ;;  %s1914_s18 = scalar_lea.sflag [#allocation3], %s269_s23 }
  0x17   : > { %s2049_s14 = sshll.u32 %s273_s13, 3  ;;  %v289_v14 = vld [vmem:[%s3595_s1 + $0x58] sm:$0xff]  ;;  %v290_v15 = vld [vmem:[%s3595_s1 + $0x60] sm:$0xff]  ;;  %v291_v16 = vld [vmem:[%s3595_s1 + $0x68] sm:$0xff]  ;;  %s271_s13 = scalar_lea.vmem [#allocation2], %s1991_s29 }
  0x18   : > { %s276_s17 = scalar_lea.vmem %s3594_s0, %s2049_s14  ;;  %v292_v17 = vld [vmem:[%s3595_s1 + $0x70] sm:$0xff]  ;;  %v293_v18 = vld [vmem:[%s3595_s1 + $0x78] sm:$0xff]  ;;  %v294_v19 = vld [vmem:[%s3595_s1 + $0x80] sm:$0xff] }
  0x19   : > { %v277_v1 = vld [vmem:[%s276_s17] sm:$0xff]  ;;  %v295_v20 = vld [vmem:[%s3595_s1 + $0x88] sm:$0xff]  ;;  %v296_v21 = vld [vmem:[%s3595_s1 + $0x90] sm:$0xff]  ;;  %s1926_s17 = scalar_lea.hbm %s3601_s7, %s2050_s9 }
  0x1a   : > { %v343_v2 = vcombine.high %v277_v1, %v277_v1  ;;  %v297_v22 = vld [vmem:[%s3595_s1 + $0x98] sm:$0xff]  ;;  %v298_v23 = vld [vmem:[%s3595_s1 + $0xa0] sm:$0xff]  ;;  %v299_v24 = vld [vmem:[%s3595_s1 + $0xa8] sm:$0xff] }
  0x1b   : > { %v300_v25 = vld [vmem:[%s3595_s1 + $0xb0] sm:$0xff]  ;;  %v301_v26 = vld [vmem:[%s3595_s1 + $0xb8] sm:$0xff]  ;;  %v302_v27 = vld [vmem:[%s3595_s1 + $0xc0] sm:$0xff] }
  0x1c   : > { %1994 = vmatprep.subr.msk.mxu0 %vm489_vm0, %v343_v2  ;;  %v303_v28 = vld [vmem:[%s3595_s1 + $0xc8] sm:$0xff]  ;;  %v304_v29 = vld [vmem:[%s3595_s1 + $0xd0] sm:$0xff]  ;;  %v305_v30 = vld [vmem:[%s3595_s1 + $0xd8] sm:$0xff] }
  0x1d   : > { %1995 = vmatpush1.msk.msra.mxu0 %vm489_vm0, %v277_v1  ;;  %v306_v31 = vld [vmem:[%s3595_s1 + $0xe0] sm:$0xff]  ;;  %v307_v32 = vld [vmem:[%s3595_s1 + $0xe8] sm:$0xff]  ;;  %v308_v33 = vld [vmem:[%s3595_s1 + $0xf0] sm:$0xff] }
  0x1e   : > { %1996 = vmatmul.mubr.msk.f32.vlgmr.msra.gmra.mxu0 %vm344_vm1, %v278_v3  ;;  %v309_v34 = vld [vmem:[%s3595_s1 + $0xf8] sm:$0xff] }
  0x1f   : > { %564 = vmatprep.mubr.f32.mxu0 %v3602_v0 }
  0x22   : > { %1997 = vmatmul.mubr.msk.f32.gmra.mxu0 %vm344_vm1, %v279_v4 }
  0x23   : > { %570 = vmatprep.mubr.f32.mxu0 %v3602_v0 }
  0x26   : > { %1998 = vmatmul.mubr.msk.f32.gmra.mxu0 %vm344_vm1, %v280_v5 }
  0x27   : > { %576 = vmatprep.mubr.f32.mxu0 %v3602_v0 }
  0x2a   : > { %1999 = vmatmul.mubr.msk.f32.gmra.mxu0 %vm344_vm1, %v281_v6 }
  0x2b   : > { %582 = vmatprep.mubr.f32.mxu0 %v3602_v0 }
  0x2e   : > { %2000 = vmatmul.mubr.msk.f32.gmra.mxu0 %vm344_vm1, %v282_v7 }
  0x2f   : > { %588 = vmatprep.mubr.f32.mxu0 %v3602_v0 }
  0x32   : > { %2001 = vmatmul.mubr.msk.f32.gmra.mxu0 %vm344_vm1, %v283_v8 }
  0x33   : > { %594 = vmatprep.mubr.f32.mxu0 %v3602_v0 }
  0x36   : > { %2002 = vmatmul.mubr.msk.f32.gmra.mxu0 %vm344_vm1, %v284_v9 }
  0x37   : > { %600 = vmatprep.mubr.f32.mxu0 %v3602_v0 }
  0x3a   : > { %2003 = vmatmul.mubr.msk.f32.gmra.mxu0 %vm344_vm1, %v285_v10 }
  0x3b   : > { %606 = vmatprep.mubr.f32.mxu0 %v3602_v0 }
  0x3e   : > { %2004 = vmatmul.mubr.msk.f32.gmra.mxu0 %vm344_vm1, %v286_v11 }
  0x3f   : > { %612 = vmatprep.mubr.f32.mxu0 %v3602_v0 }
  0x42   : > { %2005 = vmatmul.mubr.msk.f32.gmra.mxu0 %vm344_vm1, %v287_v12 }
  0x43   : > { %618 = vmatprep.mubr.f32.mxu0 %v3602_v0 }
  0x46   : > { %2006 = vmatmul.mubr.msk.f32.gmra.mxu0 %vm344_vm1, %v288_v13 }
  0x47   : > { %624 = vmatprep.mubr.f32.mxu0 %v3602_v0 }
  0x4a   : > { %2007 = vmatmul.mubr.msk.f32.gmra.mxu0 %vm344_vm1, %v289_v14 }
  0x4b   : > { %630 = vmatprep.mubr.f32.mxu0 %v3602_v0 }
  0x4e   : > { %2008 = vmatmul.mubr.msk.f32.gmra.mxu0 %vm344_vm1, %v290_v15 }
  0x4f   : > { %636 = vmatprep.mubr.f32.mxu0 %v3602_v0 }
  0x52   : > { %2009 = vmatmul.mubr.msk.f32.gmra.mxu0 %vm344_vm1, %v291_v16 }
  0x53   : > { %642 = vmatprep.mubr.f32.mxu0 %v3602_v0 }
  0x56   : > { %2010 = vmatmul.mubr.msk.f32.gmra.mxu0 %vm344_vm1, %v292_v17 }
  0x57   : > { %648 = vmatprep.mubr.f32.mxu0 %v3602_v0 }
  0x5a   : > { %2011 = vmatmul.mubr.msk.f32.gmra.mxu0 %vm344_vm1, %v293_v18 }
  0x5b   : > { %654 = vmatprep.mubr.f32.mxu0 %v3602_v0 }
  0x5e   : > { %2012 = vmatmul.mubr.msk.f32.gmra.mxu0 %vm344_vm1, %v294_v19 }
  0x5f   : > { %660 = vmatprep.mubr.f32.mxu0 %v3602_v0 }
  0x62   : > { %2013 = vmatmul.mubr.msk.f32.gmra.mxu0 %vm344_vm1, %v295_v20 }
  0x63   : > { %666 = vmatprep.mubr.f32.mxu0 %v3602_v0 }
  0x66   : > { %2014 = vmatmul.mubr.msk.f32.gmra.mxu0 %vm344_vm1, %v296_v21 }
  0x67   : > { %672 = vmatprep.mubr.f32.mxu0 %v3602_v0 }
  0x6a   : > { %2015 = vmatmul.mubr.msk.f32.gmra.mxu0 %vm344_vm1, %v297_v22 }
  0x6b   : > { %678 = vmatprep.mubr.f32.mxu0 %v3602_v0 }
  0x6e   : > { %2016 = vmatmul.mubr.msk.f32.gmra.mxu0 %vm344_vm1, %v298_v23 }
  0x6f   : > { %684 = vmatprep.mubr.f32.mxu0 %v3602_v0 }
  0x72   : > { %2017 = vmatmul.mubr.msk.f32.gmra.mxu0 %vm344_vm1, %v299_v24 }
  0x73   : > { %690 = vmatprep.mubr.f32.mxu0 %v3602_v0 }
  0x76   : > { %2018 = vmatmul.mubr.msk.f32.gmra.mxu0 %vm344_vm1, %v300_v25 }
  0x77   : > { %696 = vmatprep.mubr.f32.mxu0 %v3602_v0 }
  0x7a   : > { %2019 = vmatmul.mubr.msk.f32.gmra.mxu0 %vm344_vm1, %v301_v26 }
  0x7b   : > { %702 = vmatprep.mubr.f32.mxu0 %v3602_v0 }
  0x7e   : > { %2020 = vmatmul.mubr.msk.f32.gmra.mxu0 %vm344_vm1, %v302_v27 }
  0x7f   : > { %708 = vmatprep.mubr.f32.mxu0 %v3602_v0 }
  0x82   : > { %2021 = vmatmul.mubr.msk.f32.gmra.mxu0 %vm344_vm1, %v303_v28 }
  0x83   : > { %714 = vmatprep.mubr.f32.mxu0 %v3602_v0 }
  0x86   : > { %2022 = vmatmul.mubr.msk.f32.gmra.mxu0 %vm344_vm1, %v304_v29 }
  0x87   : > { %720 = vmatprep.mubr.f32.mxu0 %v3602_v0 }
  0x8a   : > { %2023 = vmatmul.mubr.msk.f32.gmra.mxu0 %vm344_vm1, %v305_v30 }
  0x8b   : > { %726 = vmatprep.mubr.f32.mxu0 %v3602_v0 }
  0x8e   : > { %2024 = vmatmul.mubr.msk.f32.gmra.mxu0 %vm344_vm1, %v306_v31 }
  0x8f   : > { %732 = vmatprep.mubr.f32.mxu0 %v3602_v0 }
  0x92   : > { %2025 = vmatmul.mubr.msk.f32.gmra.mxu0 %vm344_vm1, %v307_v32 }
  0x93   : > { %738 = vmatprep.mubr.f32.mxu0 %v3602_v0 }
  0x96   : > { %2026 = vmatmul.mubr.msk.f32.gmra.mxu0 %vm344_vm1, %v308_v33 }
  0x97   : > { %744 = vmatprep.mubr.f32.mxu0 %v3602_v0 }
  0x9a   : > { %2027 = vmatmul.mubr.msk.f32.gmra.mxu0 %vm344_vm1, %v309_v34 }
  0x9b   : > { %750 = vmatprep.mubr.f32.mxu0 %v3602_v0 }
  0xde   : > { %v2665_v35 = vpop.f32.mrf.mxu0 }
  0xe0   : > { %v2667_v36 = vpop.f32.mrf.mxu0 }
  0xe2   : > { %v2669_v37 = vpop.f32.mrf.mxu0 }
  0xe4   : > { %v2671_v38 = vpop.f32.mrf.mxu0 }
  0xe6   : > { %v2673_v39 = vpop.f32.mrf.mxu0 }
  0xe7   : > { %v847_v60 = vmax.f32 %v2665_v35, %v2673_v39 }
  0xe8   : > { %v2675_v40 = vpop.f32.mrf.mxu0 }
  0xe9   : > { %v868_v63 = vmax.f32 %v2667_v36, %v2675_v40 }
  0xea   : > { %v2677_v41 = vpop.f32.mrf.mxu0 }
  0xeb   : > { %v848_v61 = vmax.f32 %v2669_v37, %v2677_v41 }
  0xec   : > { %v2679_v42 = vpop.f32.mrf.mxu0 }
  0xed   : > { %v869_v1 = vmax.f32 %v2671_v38, %v2679_v42 }
  0xee   : > { %v2681_v43 = vpop.f32.mrf.mxu0 }
  0xef   : > { %v849_v2 = vmax.f32 %v847_v60, %v2681_v43 }
  0xf0   : > { %v2683_v44 = vpop.f32.mrf.mxu0 }
  0xf1   : > { %v870_v5 = vmax.f32 %v868_v63, %v2683_v44 }
  0xf2   : > { %v2685_v45 = vpop.f32.mrf.mxu0 }
  0xf3   : > { %v850_v3 = vmax.f32 %v848_v61, %v2685_v45 }
  0xf4   : > { %v2687_v46 = vpop.f32.mrf.mxu0 }
  0xf5   : > { %v871_v6 = vmax.f32 %v869_v1, %v2687_v46 }
  0xf6   : > { %v2689_v47 = vpop.f32.mrf.mxu0 }
  0xf7   : > { %v851_v7 = vmax.f32 %v849_v2, %v2689_v47 }
  0xf8   : > { %v2691_v48 = vpop.f32.mrf.mxu0 }
  0xf9   : > { %v872_v10 = vmax.f32 %v870_v5, %v2691_v48 }
  0xfa   : > { %v2693_v49 = vpop.f32.mrf.mxu0 }
  0xfb   : > { %v852_v8 = vmax.f32 %v850_v3, %v2693_v49 }
  0xfc   : > { %v2695_v50 = vpop.f32.mrf.mxu0 }
  0xfd   : > { %v873_v11 = vmax.f32 %v871_v6, %v2695_v50 }
  0xfe   : > { %v2697_v51 = vpop.f32.mrf.mxu0 }
  0xff   : > { %v853_v12 = vmax.f32 %v851_v7, %v2697_v51 }
 0x100   : > { %v2699_v52 = vpop.f32.mrf.mxu0 }
 0x101   : > { %v874_v15 = vmax.f32 %v872_v10, %v2699_v52 }
 0x102   : > { %v2701_v53 = vpop.f32.mrf.mxu0 }
 0x103   : > { %v854_v13 = vmax.f32 %v852_v8, %v2701_v53 }
 0x104   : > { %v2703_v54 = vpop.f32.mrf.mxu0 }
 0x105   : > { %v875_v16 = vmax.f32 %v873_v11, %v2703_v54 }
 0x106   : > { %v2705_v55 = vpop.f32.mrf.mxu0 }
 0x107   : > { %v855_v17 = vmax.f32 %v853_v12, %v2705_v55 }
 0x108   : > { %v2707_v56 = vpop.f32.mrf.mxu0 }
 0x109   : > { %v876_v20 = vmax.f32 %v874_v15, %v2707_v56 }
 0x10a   : > { %v2709_v57 = vpop.f32.mrf.mxu0 }
 0x10b   : > { %v856_v18 = vmax.f32 %v854_v13, %v2709_v57 }
 0x10c   : > { %v2711_v58 = vpop.f32.mrf.mxu0 }
 0x10d   : > { %v877_v21 = vmax.f32 %v875_v16, %v2711_v58 }
 0x10e   : > { %v2713_v59 = vpop.f32.mrf.mxu0 }
 0x10f   : > { %v857_v22 = vmax.f32 %v855_v17, %v2713_v59 }
 0x110   : > { %v2719_v62 = vpop.f32.mrf.mxu0 }
 0x111   : > { %v878_v25 = vmax.f32 %v876_v20, %v2719_v62 }
 0x112   : > { %v2727_v4 = vpop.f32.mrf.mxu0 }
 0x113   : > { %v858_v23 = vmax.f32 %v856_v18, %v2727_v4 }
 0x114   : > { %v640_v9 = vpop.f32.mrf.mxu0 }
 0x115   : > { %v879_v26 = vmax.f32 %v877_v21, %v640_v9 }
 0x116   : > { %v644_v14 = vpop.f32.mrf.mxu0 }
 0x117   : > { %v859_v27 = vmax.f32 %v857_v22, %v644_v14 }
 0x118   : > { %v646_v19 = vpop.f32.mrf.mxu0 }
 0x119   : > { %v880_v30 = vmax.f32 %v878_v25, %v646_v19 }
 0x11a   : > { %v650_v24 = vpop.f32.mrf.mxu0 }
 0x11b   : > { %v860_v28 = vmax.f32 %v858_v23, %v650_v24 }
 0x11c   : > { %v652_v29 = vpop.f32.mrf.mxu0 }
 0x11d   : > { %v861_v31 = vmax.f32 %v859_v27, %v860_v28  ;;  %v881_v32 = vmax.f32 %v879_v26, %v652_v29 }
 0x11e   : > { %v2746_v33 = vpop.f32.mrf.mxu0 }
 0x11f   : > { %v862_v34 = vrot.slane %v861_v31, 4  ;;  %v882_v60 = vmax.f32 %v880_v30, %v881_v32 }
 0x120   : > { %v2748_v61 = vpop.f32.mrf.mxu0 }
 0x121   : > { %v863_v63 = vmax.f32 %v861_v31, %v862_v34  ;;  %v883_v1 = vrot.slane %v882_v60, 4 }
 0x122   : > { %v2750_v2 = vpop.f32.mrf.mxu0 }
 0x123   : > { %v864_v3 = vrot.slane %v863_v63, 2  ;;  %v884_v5 = vmax.f32 %v882_v60, %v883_v1 }
 0x124   : > { %v2752_v6 = vpop.f32.mrf.mxu0 }
 0x125   : > { %v865_v7 = vmax.f32 %v863_v63, %v864_v3  ;;  %v885_v8 = vrot.slane %v884_v5, 2 }
 0x126   : > { %v2754_v10 = vpop.f32.mrf.mxu0 }
 0x127   : > { %v866_v11 = vrot.slane %v865_v7, 1  ;;  %v886_v12 = vmax.f32 %v884_v5, %v885_v8 }
 0x128   : > { %v2756_v13 = vpop.f32.mrf.mxu0 }
 0x129   : > { %v2758_v15 = vmax.f32 %v865_v7, %v866_v11  ;;  %v887_v16 = vrot.slane %v886_v12, 1 }
 0x12a   : > { %v2760_v17 = vpop.f32.mrf.mxu0 }
 0x12b   : > { %v919_v18 = vsub.f32 %v650_v24, %v2758_v15  ;;  %v2763_v20 = vmax.f32 %v886_v12, %v887_v16  ;;  %v917_v22 = vsub.f32 %v644_v14, %v2758_v15  ;;  %v915_v30 = vsub.f32 %v2727_v4, %v2758_v15 }
 0x12c   : > { %v2765_v21 = vpop.f32.mrf.mxu0  ;;  %v911_v63 = vsub.f32 %v2709_v57, %v2758_v15  ;;  %v909_v5 = vsub.f32 %v2705_v55, %v2758_v15  ;;  %v907_v11 = vsub.f32 %v2701_v53, %v2758_v15 }
 0x12d   : > { %v920_v23 = vsub.f32 %v652_v29, %v2763_v20  ;;  %v918_v25 = vsub.f32 %v646_v19, %v2763_v20  ;;  %v981_v26 = vmul.f32 1.442695, %v919_v18  ;;  %v916_v28 = vsub.f32 %v640_v9, %v2763_v20 }
 0x12e   : > { %v2770_v27 = vpop.f32.mrf.mxu0  ;;  %v914_v32 = vsub.f32 %v2719_v62, %v2763_v20  ;;  %v977_v14 = vmul.f32 1.442695, %v917_v22  ;;  %v913_v29 = vsub.f32 %v2713_v59, %v2758_v15  ;;  %v912_v60 = vsub.f32 %v2711_v58, %v2763_v20 }
 0x12f   : > { %v983_v31 = vmul.f32 1.442695, %v920_v23  ;;  %v979_v24 = vmul.f32 1.442695, %v918_v25  ;;  %v975_v19 = vmul.f32 1.442695, %v916_v28  ;;  %v910_v1 = vsub.f32 %v2707_v56, %v2763_v20 }
 0x130   : > { %v2777_v34 = vpop.f32.mrf.mxu0  ;;  %v973_v4 = vmul.f32 1.442695, %v915_v30  ;;  %v971_v62 = vmul.f32 1.442695, %v914_v32  ;;  %v969_v59 = vmul.f32 1.442695, %v913_v29  ;;  %v908_v7 = vsub.f32 %v2703_v54, %v2763_v20 }
 0x131   : > { %2101 = vpow2.f32 %v983_v31  ;;  %v967_v58 = vmul.f32 1.442695, %v912_v60  ;;  %v965_v57 = vmul.f32 1.442695, %v911_v63  ;;  %v963_v56 = vmul.f32 1.442695, %v910_v1 }
 0x132   : > { %2103 = vpow2.f32 %v981_v26  ;;  %v2783_v9 = vpop.f32.mrf.mxu0  ;;  %v906_v12 = vsub.f32 %v2699_v52, %v2763_v20  ;;  %v961_v55 = vmul.f32 1.442695, %v909_v5  ;;  %v905_v18 = vsub.f32 %v2697_v51, %v2758_v15 }
 0x133   : > { %2105 = vpow2.f32 %v979_v24  ;;  %v959_v54 = vmul.f32 1.442695, %v908_v7  ;;  %v904_v22 = vsub.f32 %v2695_v50, %v2763_v20  ;;  %v957_v53 = vmul.f32 1.442695, %v907_v11 }
 0x134   : > { %v2789_v3 = vpop.f32.mrf.mxu0  ;;  %2107 = vpow2.f32 %v977_v14  ;;  %v903_v25 = vsub.f32 %v2693_v49, %v2758_v15  ;;  %v955_v52 = vmul.f32 1.442695, %v906_v12  ;;  %v902_v26 = vsub.f32 %v2691_v48, %v2763_v20 }
 0x135   : > { %2109 = vpow2.f32 %v975_v19  ;;  %v953_v51 = vmul.f32 1.442695, %v905_v18  ;;  %v901_v30 = vsub.f32 %v2689_v47, %v2758_v15  ;;  %v951_v50 = vmul.f32 1.442695, %v904_v22 }
 0x136   : > { %v2795_v8 = vpop.f32.mrf.mxu0  ;;  %2111 = vpow2.f32 %v973_v4  ;;  %v900_v31 = vsub.f32 %v2687_v46, %v2763_v20  ;;  %v949_v32 = vmul.f32 1.442695, %v903_v25  ;;  %v899_v48 = vsub.f32 %v2685_v45, %v2758_v15 }
 0x137   : > { %2113 = vpow2.f32 %v971_v62  ;;  %v947_v47 = vmul.f32 1.442695, %v902_v26  ;;  %v898_v29 = vsub.f32 %v2683_v44, %v2763_v20  ;;  %v945_v60 = vmul.f32 1.442695, %v901_v30 }
 0x138   : > { %v2801_v16 = vpop.f32.mrf.mxu0  ;;  %2115 = vpow2.f32 %v969_v59  ;;  %v897_v45 = vsub.f32 %v2681_v43, %v2758_v15  ;;  %v943_v63 = vmul.f32 1.442695, %v900_v31  ;;  %v896_v44 = vsub.f32 %v2679_v42, %v2763_v20 }
 0x139   : > { %2117 = vpow2.f32 %v967_v58  ;;  %v941_v59 = vmul.f32 1.442695, %v899_v48  ;;  %v895_v43 = vsub.f32 %v2677_v41, %v2758_v15  ;;  %v939_v58 = vmul.f32 1.442695, %v898_v29 }
 0x13a   : > { %v2807_v23 = vpop.f32.mrf.mxu0  ;;  %2119 = vpow2.f32 %v965_v57  ;;  %v894_v42 = vsub.f32 %v2675_v40, %v2763_v20  ;;  %v937_v11 = vmul.f32 1.442695, %v897_v45  ;;  %v893_v41 = vsub.f32 %v2673_v39, %v2758_v15 }
 0x13b   : > { %2121 = vpow2.f32 %v963_v56  ;;  %v935_v12 = vmul.f32 1.442695, %v896_v44  ;;  %v892_v40 = vsub.f32 %v2671_v38, %v2763_v20  ;;  %v891_v39 = vsub.f32 %v2669_v37, %v2758_v15 }
 0x13c   : > { %v2813_v28 = vpop.f32.mrf.mxu0  ;;  %2123 = vpow2.f32 %v961_v55  ;;  %v890_v38 = vsub.f32 %v2667_v36, %v2763_v20  ;;  %v929_v26 = vmul.f32 1.442695, %v893_v41  ;;  %v889_v37 = vsub.f32 %v2665_v35, %v2758_v15 }
 0x13d   : > { %2125 = vpow2.f32 %v959_v54  ;;  %v933_v54 = vmul.f32 1.442695, %v895_v43  ;;  %v927_v30 = vmul.f32 1.442695, %v892_v40  ;;  %v925_v20 = vmul.f32 1.442695, %v891_v39 }
 0x13e   : > { %v2819_v24 = vpop.eup %2101  ;;  %v2821_v49 = vpop.f32.mrf.mxu0  ;;  %2127 = vpow2.f32 %v957_v53  ;;  %v931_v53 = vmul.f32 1.442695, %v894_v42  ;;  %v923_v35 = vmul.f32 1.442695, %v890_v38  ;;  %v921_v48 = vmul.f32 1.442695, %v889_v37 }
 0x13f   : > { %v2825_v14 = vpop.eup %2103  ;;  %985 = vmatprep.subr.mxu1 %v2819_v24  ;;  %2129 = vpow2.f32 %v955_v52 }
 0x140   : > { %v2830_v19 = vpop.eup %2105  ;;  %v2832_v46 = vpop.f32.mrf.mxu0  ;;  %986 = vmatpush1.msra.mxu1 %v2825_v14  ;;  %2131 = vpow2.f32 %v953_v51 }
 0x141   : > { %v2837_v4 = vpop.eup %2107  ;;  %987 = vmatprep.subr.mxu1 %v2830_v19  ;;  %2133 = vpow2.f32 %v951_v50 }
 0x142   : > { %v2842_v62 = vpop.eup %2109  ;;  %v2844_v1 = vpop.f32.mrf.mxu0  ;;  %988 = vmatpush1.msra.mxu1 %v2837_v4  ;;  %2135 = vpow2.f32 %v949_v32 }
 0x143   : > { %v2849_v5 = vpop.eup %2111  ;;  %989 = vmatprep.subr.mxu1 %v2842_v62  ;;  %2137 = vpow2.f32 %v947_v47 }
 0x144   : > { %v2854_v7 = vpop.eup %2113  ;;  %v2856_v57 = vpop.f32.mrf.mxu0  ;;  %990 = vmatpush1.msra.mxu1 %v2849_v5  ;;  %2139 = vpow2.f32 %v945_v60 }
 0x145   : > { %v2861_v56 = vpop.eup %2115  ;;  %991 = vmatprep.subr.mxu1 %v2854_v7  ;;  %2141 = vpow2.f32 %v943_v63 }
 0x146   : > { %3632 = vst [vmem:[#allocation5_spill] sm:$0xff] %v2861_v56  ;;  %v2866_v55 = vpop.eup %2117  ;;  %v2868_v18 = vpop.f32.mrf.mxu0  ;;  %992 = vmatpush1.msra.mxu1 %v2861_v56  ;;  %2143 = vpow2.f32 %v941_v59 }
 0x147   : > { %3633 = vst [vmem:[#allocation6_spill] sm:$0xff] %v2866_v55  ;;  %v2873_v22 = vpop.eup %2119  ;;  %993 = vmatprep.subr.mxu1 %v2866_v55  ;;  %2145 = vpow2.f32 %v939_v58 }
 0x148   : > { %3634 = vst [vmem:[#allocation7_spill] sm:$0xff] %v2873_v22  ;;  %v2878_v25 = vpop.eup %2121  ;;  %v2880_v52 = vpop.f32.mrf.mxu0  ;;  %994 = vmatpush1.msra.mxu1 %v2873_v22  ;;  %2147 = vpow2.f32 %v937_v11 }
 0x149   : > { %3635 = vst [vmem:[#allocation8_spill] sm:$0xff] %v2878_v25  ;;  %v2885_v51 = vpop.eup %2123  ;;  %995 = vmatprep.subr.mxu1 %v2878_v25  ;;  %2149 = vpow2.f32 %v935_v12 }
 0x14a   : > { %3636 = vst [vmem:[#allocation9_spill] sm:$0xff] %v2885_v51  ;;  %v2888_v50 = vpop.eup %2125  ;;  %v2890_v36 = vpop.f32.mrf.mxu0  ;;  %996 = vmatpush1.msra.mxu1 %v2885_v51  ;;  %2151 = vpow2.f32 %v933_v54 }
 0x14b   : > { %3637 = vst [vmem:[#allocation10_spill] sm:$0xff] %v2888_v50  ;;  %v2893_v31 = vpop.eup %2127  ;;  %997 = vmatprep.subr.mxu1 %v2888_v50  ;;  %2153 = vpow2.f32 %v931_v53 }
 0x14c   : > { %3638 = vst [vmem:[#allocation11_spill] sm:$0xff] %v2893_v31  ;;  %v2896_v15 = vpop.eup %2129  ;;  %v2898_v32 = vpop.f32.mrf.mxu0  ;;  %998 = vmatpush1.msra.mxu1 %v2893_v31  ;;  %2155 = vpow2.f32 %v929_v26 }
 0x14d   : > { %3639 = vst [vmem:[#allocation12_spill] sm:$0xff] %v2896_v15  ;;  %v2901_v47 = vpop.eup %2131  ;;  %999 = vmatprep.subr.mxu1 %v2896_v15  ;;  %2157 = vpow2.f32 %v927_v30 }
 0x14e   : > { %3640 = vst [vmem:[#allocation13_spill] sm:$0xff] %v2901_v47  ;;  %v2904_v29 = vpop.eup %2133  ;;  %v2906_v60 = vpop.f32.mrf.mxu0  ;;  %1000 = vmatpush1.msra.mxu1 %v2901_v47  ;;  %2159 = vpow2.f32 %v925_v20 }
 0x14f   : > { %3641 = vst [vmem:[#allocation14_spill] sm:$0xff] %v2904_v29  ;;  %v2909_v45 = vpop.eup %2135  ;;  %1001 = vmatprep.subr.mxu1 %v2904_v29  ;;  %2161 = vpow2.f32 %v923_v35 }
 0x150   : > { %3642 = vst [vmem:[#allocation15_spill] sm:$0xff] %v2909_v45  ;;  %v2912_v63 = vpop.eup %2137  ;;  %v2914_v44 = vpop.f32.mrf.mxu0  ;;  %1002 = vmatpush1.msra.mxu1 %v2909_v45  ;;  %2163 = vpow2.f32 %v921_v48 }
 0x151   : > { %3643 = vst [vmem:[#allocation16_spill] sm:$0xff] %v2912_v63  ;;  %v2917_v59 = vpop.eup %2139  ;;  %1003 = vmatprep.subr.mxu1 %v2912_v63  ;;  %v1246_v30 = vmax.f32 %v2906_v60, %v2914_v44 }
 0x152   : > { %3644 = vst [vmem:[#allocation17_spill] sm:$0xff] %v2917_v59  ;;  %v2920_v43 = vpop.eup %2141  ;;  %v2922_v58 = vpop.f32.mrf.mxu0  ;;  %1004 = vmatpush1.msra.mxu1 %v2917_v59 }
 0x153   : > { %3645 = vst [vmem:[#allocation18_spill] sm:$0xff] %v2920_v43  ;;  %v2925_v42 = vpop.eup %2143  ;;  %1005 = vmatprep.subr.mxu1 %v2920_v43 }
 0x154   : > { %3646 = vst [vmem:[#allocation19_spill] sm:$0xff] %v2925_v42  ;;  %v2928_v11 = vpop.eup %2145  ;;  %v2930_v41 = vpop.f32.mrf.mxu0  ;;  %1006 = vmatpush1.msra.mxu1 %v2925_v42 }
 0x155   : > { %3647 = vst [vmem:[#allocation20_spill] sm:$0xff] %v2928_v11  ;;  %v2933_v12 = vpop.eup %2147  ;;  %1007 = vmatprep.subr.mxu1 %v2928_v11  ;;  %v1249_v40 = vmax.f32 %v2922_v58, %v2930_v41 }
 0x156   : > { %3648 = vst [vmem:[#allocation21_spill] sm:$0xff] %v2933_v12  ;;  %v2938_v54 = vpop.eup %2149  ;;  %v2940_v39 = vpop.f32.mrf.mxu0  ;;  %1008 = vmatpush1.msra.mxu1 %v2933_v12 }
 0x157   : > { %3649 = vst [vmem:[#allocation22_spill] sm:$0xff] %v2938_v54  ;;  %v2943_v53 = vpop.eup %2151  ;;  %1009 = vmatprep.subr.mxu1 %v2938_v54  ;;  %1250 = vmax.xlane.f32.xlu1 %v1249_v40 }
 0x158   : > { %3650 = vst [vmem:[#allocation23_spill] sm:$0xff] %v2943_v53  ;;  %v2946_v38 = vpop.eup %2153  ;;  %v2948_v26 = vpop.f32.mrf.mxu0  ;;  %1010 = vmatpush1.msra.mxu1 %v2943_v53 }
 0x159   : > { %3651 = vst [vmem:[#allocation24_spill] sm:$0xff] %v2946_v38  ;;  %v2951_v37 = vpop.eup %2155  ;;  %1011 = vmatprep.subr.mxu1 %v2946_v38  ;;  %v326_v38 = vld [vmem:[%s3597_s3] sm:$0xff]  ;;  %v1252_v54 = vmax.f32 %v2940_v39, %v2948_v26 }
 0x15a   : > { %3652 = vst [vmem:[#allocation25_spill] sm:$0xff] %v2951_v37  ;;  %v2956_v20 = vpop.eup %2157  ;;  %v2958_v35 = vpop.f32.mrf.mxu0  ;;  %1012 = vmatpush1.msra.mxu1 %v2951_v37  ;;  %v1240_v37 = vmax.f32 %v2868_v18, %v2880_v52 }
 0x15b   : > { %3653 = vst [vmem:[#allocation26_spill] sm:$0xff] %v2956_v20  ;;  %v2961_v48 = vpop.eup %2159  ;;  %1013 = vmatprep.subr.mxu1 %v2956_v20  ;;  %1247 = vmax.xlane.f32.xlu1 %v1246_v30  ;;  %v327_v20 = vld [vmem:[%s3597_s3 + $0x8] sm:$0xff] }
 0x15c   : > { %3654 = vst [vmem:[#allocation27_spill] sm:$0xff] %v2961_v48  ;;  %v2964_v40 = vpop.eup %2161  ;;  %v2966_v0 = vpop.f32.mrf.mxu0  ;;  %1014 = vmatpush1.msra.mxu1 %v2961_v48  ;;  %v3657_v48 = vmov 0.0  }
 0x15d   : > { %3655 = vst [vmem:[#allocation28_spill] sm:$0xff] %v2964_v40  ;;  %v2972_v53 = vpop.eup %2163  ;;  %1015 = vmatprep.subr.mxu1 %v2964_v40  ;;  %v1255_v30 = vmax.f32 %v2958_v35, %v2966_v0  ;;  %v1234_v40 = vmax.f32 %v2821_v49, %v2832_v46 }
 0x15e   : > { %3656 = vst [vmem:[#allocation29_spill] sm:$0xff] %v2972_v53  ;;  %1016 = vmatpush1.msra.mxu1 %v2972_v53 }
 0x15f   : > { %1050 = vmatmul.mubr.f32.vlgmr.msra.gmra.mxu1 %v326_v38  ;;  %1241 = vmax.xlane.f32.xlu1 %v1240_v37  ;;  %v328_v38 = vld [vmem:[%s3597_s3 + $0x10] sm:$0xff]  ;;  %v1228_v37 = vmax.f32 %v2795_v8, %v2801_v16 }
 0x160   : > { %1256 = vmax.xlane.f32.xlu0 %v1255_v30  ;;  %1055 = vmatprep.mubr.f32.mxu1 %v3657_v48  ;;  %v1243_v30 = vmax.f32 %v2890_v36, %v2898_v32 }
 0x163   : > { %1056 = vmatmul.mubr.f32.gmra.mxu1 %v327_v20  ;;  %1235 = vmax.xlane.f32.xlu1 %v1234_v40  ;;  %v1222_v20 = vmax.f32 %v2770_v27, %v2777_v34  ;;  %v1237_v40 = vmax.f32 %v2844_v1, %v2856_v57 }
 0x164   : > { %1253 = vmax.xlane.f32.xlu0 %v1252_v54  ;;  %1061 = vmatprep.mubr.f32.mxu1 %v3657_v48  ;;  %v329_v54 = vld [vmem:[%s3597_s3 + $0x18] sm:$0xff] }
 0x167   : > { %1062 = vmatmul.mubr.f32.gmra.mxu1 %v328_v38  ;;  %1229 = vmax.xlane.f32.xlu1 %v1228_v37  ;;  %v330_v38 = vld [vmem:[%s3597_s3 + $0x20] sm:$0xff]  ;;  %v1216_v37 = vmax.f32 %v2754_v10, %v2756_v13 }
 0x168   : > { %1244 = vmax.xlane.f32.xlu0 %v1243_v30  ;;  %1067 = vmatprep.mubr.f32.mxu1 %v3657_v48  ;;  %v1231_v30 = vmax.f32 %v2807_v23, %v2813_v28 }
 0x16b   : > { %1068 = vmatmul.mubr.f32.gmra.mxu1 %v329_v54  ;;  %1223 = vmax.xlane.f32.xlu1 %v1222_v20  ;;  %v331_v54 = vld [vmem:[%s3597_s3 + $0x28] sm:$0xff]  ;;  %v1210_v20 = vmax.f32 %v2746_v33, %v2748_v61 }
 0x16c   : > { %1238 = vmax.xlane.f32.xlu0 %v1237_v40  ;;  %1073 = vmatprep.mubr.f32.mxu1 %v3657_v48  ;;  %v1225_v40 = vmax.f32 %v2783_v9, %v2789_v3 }
 0x16f   : > { %1074 = vmatmul.mubr.f32.gmra.mxu1 %v330_v38  ;;  %1217 = vmax.xlane.f32.xlu1 %v1216_v37  ;;  %v332_v38 = vld [vmem:[%s3597_s3 + $0x30] sm:$0xff]  ;;  %v1219_v37 = vmax.f32 %v2760_v17, %v2765_v21 }
 0x170   : > { %1232 = vmax.xlane.f32.xlu0 %v1231_v30  ;;  %1079 = vmatprep.mubr.f32.mxu1 %v3657_v48  ;;  %v333_v30 = vld [vmem:[%s3597_s3 + $0x38] sm:$0xff] }
 0x173   : > { %1080 = vmatmul.mubr.f32.gmra.mxu1 %v331_v54  ;;  %1211 = vmax.xlane.f32.xlu1 %v1210_v20  ;;  %v1213_v54 = vmax.f32 %v2750_v2, %v2752_v6  ;;  %v334_v20 = vld [vmem:[%s3597_s3 + $0x40] sm:$0xff] }
 0x174   : > { %1226 = vmax.xlane.f32.xlu0 %v1225_v40  ;;  %1085 = vmatprep.mubr.f32.mxu1 %v3657_v48  ;;  %v335_v40 = vld [vmem:[%s3597_s3 + $0x48] sm:$0xff] }
 0x177   : > { %1086 = vmatmul.mubr.f32.gmra.mxu1 %v332_v38  ;;  %v336_v38 = vld [vmem:[%s3597_s3 + $0x50] sm:$0xff] }
 0x178   : > { %1220 = vmax.xlane.f32.xlu0 %v1219_v37  ;;  %1091 = vmatprep.mubr.f32.mxu1 %v3657_v48  ;;  %v337_v37 = vld [vmem:[%s3597_s3 + $0x58] sm:$0xff] }
 0x17b   : > { %1092 = vmatmul.mubr.f32.gmra.mxu1 %v333_v30  ;;  %v338_v30 = vld [vmem:[%s3597_s3 + $0x60] sm:$0xff] }
 0x17c   : > { %1214 = vmax.xlane.f32.xlu0 %v1213_v54  ;;  %1097 = vmatprep.mubr.f32.mxu1 %v3657_v48  ;;  %v339_v54 = vld [vmem:[%s3597_s3 + $0x68] sm:$0xff] }
 0x17f   : > { %1098 = vmatmul.mubr.f32.gmra.mxu1 %v334_v20  ;;  %v310_v20 = vld [vmem:[%s3595_s1 + $0x100] sm:$0xff] }
 0x180   : > { %1103 = vmatprep.mubr.f32.mxu1 %v3657_v48  ;;  %2028 = vmatmul.mubr.msk.f32.gmra.mxu0 %vm344_vm1, %v310_v20  ;;  %v314_v20 = vld [vmem:[%s3595_s1 + $0x120] sm:$0xff] }
 0x181   : > { %756 = vmatprep.mubr.f32.mxu0 %v3657_v48 }
 0x183   : > { %1104 = vmatmul.mubr.f32.gmra.mxu1 %v335_v40  ;;  %v340_v40 = vld [vmem:[%s3597_s3 + $0x70] sm:$0xff] }
 0x184   : > { %1109 = vmatprep.mubr.f32.mxu1 %v3657_v48 }
 0x187   : > { %1110 = vmatmul.mubr.f32.gmra.mxu1 %v336_v38  ;;  %v311_v38 = vld [vmem:[%s3595_s1 + $0x108] sm:$0xff] }
 0x188   : > { %1115 = vmatprep.mubr.f32.mxu1 %v3657_v48  ;;  %2029 = vmatmul.mubr.msk.f32.gmra.mxu0 %vm344_vm1, %v311_v38  ;;  %v316_v38 = vld [vmem:[%s3595_s1 + $0x130] sm:$0xff] }
 0x189   : > { %762 = vmatprep.mubr.f32.mxu0 %v3657_v48 }
 0x18b   : > { %1116 = vmatmul.mubr.f32.gmra.mxu1 %v337_v37  ;;  %v341_v37 = vld [vmem:[%s3597_s3 + $0x78] sm:$0xff] }
 0x18c   : > { %1121 = vmatprep.mubr.f32.mxu1 %v3657_v48 }
 0x18f   : > { %1122 = vmatmul.mubr.f32.gmra.mxu1 %v338_v30  ;;  %v312_v30 = vld [vmem:[%s3595_s1 + $0x110] sm:$0xff] }
 0x190   : > { %1127 = vmatprep.mubr.f32.mxu1 %v3657_v48  ;;  %2030 = vmatmul.mubr.msk.f32.gmra.mxu0 %vm344_vm1, %v312_v30  ;;  %v318_v30 = vld [vmem:[%s3595_s1 + $0x140] sm:$0xff] }
 0x191   : > { %768 = vmatprep.mubr.f32.mxu0 %v3657_v48 }
 0x193   : > { %1128 = vmatmul.mubr.f32.gmra.mxu1 %v339_v54  ;;  %v313_v54 = vld [vmem:[%s3595_s1 + $0x118] sm:$0xff] }
 0x194   : > { %1133 = vmatprep.mubr.f32.mxu1 %v3657_v48  ;;  %2031 = vmatmul.mubr.msk.f32.gmra.mxu0 %vm344_vm1, %v313_v54  ;;  %v319_v54 = vld [vmem:[%s3595_s1 + $0x148] sm:$0xff] }
 0x195   : > { %774 = vmatprep.mubr.f32.mxu0 %v3657_v48 }
 0x197   : > { %1134 = vmatmul.mubr.f32.gmra.mxu1 %v340_v40  ;;  %v315_v40 = vld [vmem:[%s3595_s1 + $0x128] sm:$0xff] }
 0x198   : > { %1139 = vmatprep.mubr.f32.mxu1 %v3657_v48  ;;  %2032 = vmatmul.mubr.msk.f32.gmra.mxu0 %vm344_vm1, %v314_v20  ;;  %v320_v20 = vld [vmem:[%s3595_s1 + $0x150] sm:$0xff] }
 0x199   : > { %780 = vmatprep.mubr.f32.mxu0 %v3657_v48 }
 0x19b   : > { %1140 = vmatmul.mubr.f32.gmra.mxu1 %v341_v37  ;;  %v317_v37 = vld [vmem:[%s3595_s1 + $0x138] sm:$0xff] }
 0x19c   : > { %2033 = vmatmul.mubr.msk.f32.gmra.mxu0 %vm344_vm1, %v315_v40  ;;  %v321_v40 = vld [vmem:[%s3595_s1 + $0x158] sm:$0xff] }
 0x19d   : > { %786 = vmatprep.mubr.f32.mxu0 %v3657_v48 }
 0x1a0   : > { %2034 = vmatmul.mubr.msk.f32.gmra.mxu0 %vm344_vm1, %v316_v38  ;;  %v322_v38 = vld [vmem:[%s3595_s1 + $0x160] sm:$0xff] }
 0x1a1   : > { %792 = vmatprep.mubr.f32.mxu0 %v3657_v48 }
 0x1a4   : > { %2035 = vmatmul.mubr.msk.f32.gmra.mxu0 %vm344_vm1, %v317_v37  ;;  %v323_v37 = vld [vmem:[%s3595_s1 + $0x168] sm:$0xff] }
 0x1a5   : > { %798 = vmatprep.mubr.f32.mxu0 %v3657_v48 }
 0x1a8   : > { %2036 = vmatmul.mubr.msk.f32.gmra.mxu0 %vm344_vm1, %v318_v30  ;;  %v324_v30 = vld [vmem:[%s3595_s1 + $0x170] sm:$0xff] }
 0x1a9   : > { %804 = vmatprep.mubr.f32.mxu0 %v3657_v48 }
 0x1ac   : > { %2037 = vmatmul.mubr.msk.f32.gmra.mxu0 %vm344_vm1, %v319_v54  ;;  %v325_v54 = vld [vmem:[%s3595_s1 + $0x178] sm:$0xff] }
 0x1ad   : > { %810 = vmatprep.mubr.f32.mxu0 %v3657_v48 }
 0x1b0   : > { %2038 = vmatmul.mubr.msk.f32.gmra.mxu0 %vm344_vm1, %v320_v20 }
 0x1b1   : > { %816 = vmatprep.mubr.f32.mxu0 %v3657_v48 }
 0x1b4   : > { %2039 = vmatmul.mubr.msk.f32.gmra.mxu0 %vm344_vm1, %v321_v40 }
 0x1b5   : > { %822 = vmatprep.mubr.f32.mxu0 %v3657_v48 }
 0x1b8   : > { %2040 = vmatmul.mubr.msk.f32.gmra.mxu0 %vm344_vm1, %v322_v38 }
 0x1b9   : > { %828 = vmatprep.mubr.f32.mxu0 %v3657_v48 }
 0x1bc   : > { %2041 = vmatmul.mubr.msk.f32.gmra.mxu0 %vm344_vm1, %v323_v37 }
 0x1bd   : > { %834 = vmatprep.mubr.f32.mxu0 %v3657_v48 }
 0x1c0   : > { %2042 = vmatmul.mubr.msk.f32.gmra.mxu0 %vm344_vm1, %v324_v30 }
 0x1c1   : > { %840 = vmatprep.mubr.f32.mxu0 %v3657_v48 }
 0x1c4   : > { %2043 = vmatmul.mubr.msk.f32.gmra.mxu0 %vm344_vm1, %v325_v54 }
 0x1c5   : > { %1843 = vmatprep.mubr.f32.mxu0 %v3657_v48 }
 0x1e0   : > { %v1251_v20 = vpop.xlane.xlu1 %1250 }
 0x1e1   : > { %v1284_v40 = vsub.f32 %v2922_v58, %v1251_v20  ;;  %v1285_v37 = vsub.f32 %v2930_v41, %v1251_v20 }
 0x1e3   : > { %v1342_v12 = vmul.f32 1.442695, %v1284_v40  ;;  %v1344_v11 = vmul.f32 1.442695, %v1285_v37 }
 0x1e4   : > { %v1248_v38 = vpop.xlane.xlu1 %1247 }
 0x1e5   : > { %v1282_v53 = vsub.f32 %v2906_v60, %v1248_v38  ;;  %v1283_v42 = vsub.f32 %v2914_v44, %v1248_v38  ;;  %2165 = vpow2.f32 %v1342_v12 }
 0x1e6   : > { %2167 = vpow2.f32 %v1344_v11 }
 0x1e7   : > { %v1338_v59 = vmul.f32 1.442695, %v1282_v53  ;;  %v1340_v29 = vmul.f32 1.442695, %v1283_v42 }
 0x1e8   : > { %v1242_v30 = vpop.xlane.xlu1 %1241 }
 0x1e9   : > { %v1257_v43 = vpop.xlane.xlu0 %1256  ;;  %v1278_v41 = vsub.f32 %v2868_v18, %v1242_v30  ;;  %2169 = vpow2.f32 %v1338_v59  ;;  %v1279_v20 = vsub.f32 %v2880_v52, %v1242_v30 }
 0x1ea   : > { %v1288_v63 = vsub.f32 %v2958_v35, %v1257_v43  ;;  %v1289_v54 = vsub.f32 %v2966_v0, %v1257_v43 }
 0x1eb   : > { %v1332_v12 = vmul.f32 1.442695, %v1279_v20 }
 0x1ec   : > { %v1350_v48 = vmul.f32 1.442695, %v1288_v63  ;;  %v1352_v45 = vmul.f32 1.442695, %v1289_v54  ;;  %v1236_v58 = vpop.xlane.xlu1 %1235  ;;  %v1330_v63 = vmul.f32 1.442695, %v1278_v41 }
 0x1ed   : > { %v1254_v60 = vpop.xlane.xlu0 %1253  ;;  %v1274_v11 = vsub.f32 %v2821_v49, %v1236_v58  ;;  %v1275_v18 = vsub.f32 %v2832_v46, %v1236_v58 }
 0x1ee   : > { %v1286_v44 = vsub.f32 %v2940_v39, %v1254_v60  ;;  %v1287_v53 = vsub.f32 %v2948_v26, %v1254_v60  ;;  %2171 = vpow2.f32 %v1350_v48 }
 0x1ef   : > { %2173 = vpow2.f32 %v1352_v45  ;;  %v1322_v45 = vmul.f32 1.442695, %v1274_v11  ;;  %v1324_v40 = vmul.f32 1.442695, %v1275_v18 }
 0x1f0   : > { %v1346_v35 = vmul.f32 1.442695, %v1286_v44  ;;  %v1348_v0 = vmul.f32 1.442695, %v1287_v53  ;;  %v1230_v43 = vpop.xlane.xlu1 %1229  ;;  %2175 = vpow2.f32 %v1340_v29 }
 0x1f1   : > { %v1245_v42 = vpop.xlane.xlu0 %1244  ;;  %v1270_v48 = vsub.f32 %v2795_v8, %v1230_v43  ;;  %v1271_v30 = vsub.f32 %v2801_v16, %v1230_v43 }
 0x1f2   : > { %v1280_v59 = vsub.f32 %v2890_v36, %v1245_v42  ;;  %v1281_v52 = vsub.f32 %v2898_v32, %v1245_v42  ;;  %2177 = vpow2.f32 %v1346_v35  ;;  %v3161_v37 = vpop.eup %2165 }
 0x1f3   : > { %2179 = vpow2.f32 %v1348_v0  ;;  %v1314_v54 = vmul.f32 1.442695, %v1270_v48  ;;  %v3164_v8 = vpop.eup %2167  ;;  %v1316_v0 = vmul.f32 1.442695, %v1271_v30 }
 0x1f4   : > { %v1334_v39 = vmul.f32 1.442695, %v1280_v59  ;;  %v1336_v26 = vmul.f32 1.442695, %v1281_v52  ;;  %2181 = vpow2.f32 %v1330_v63  ;;  %v1224_v49 = vpop.xlane.xlu1 %1223 }
 0x1f5   : > { %v1239_v29 = vpop.xlane.xlu0 %1238  ;;  %2183 = vpow2.f32 %v1332_v12  ;;  %v1266_v41 = vsub.f32 %v2770_v27, %v1224_v49  ;;  %v1267_v43 = vsub.f32 %v2777_v34, %v1224_v49 }
 0x1f6   : > { %v1276_v38 = vsub.f32 %v2844_v1, %v1239_v29  ;;  %v1277_v46 = vsub.f32 %v2856_v57, %v1239_v29  ;;  %2185 = vpow2.f32 %v1334_v39  ;;  %v3169_v60 = vpop.eup %2169 }
 0x1f7   : > { %2187 = vpow2.f32 %v1336_v26  ;;  %v1308_v39 = vmul.f32 1.442695, %v1267_v43 }
 0x1f8   : > { %v1326_v36 = vmul.f32 1.442695, %v1276_v38  ;;  %v1328_v32 = vmul.f32 1.442695, %v1277_v46  ;;  %2189 = vpow2.f32 %v1322_v45  ;;  %v1218_v44 = vpop.xlane.xlu1 %1217 }
 0x1f9   : > { %v1233_v58 = vpop.xlane.xlu0 %1232  ;;  %2191 = vpow2.f32 %v1324_v40  ;;  %v1262_v18 = vsub.f32 %v2754_v10, %v1218_v44 }
 0x1fa   : > { %v1272_v1 = vsub.f32 %v2807_v23, %v1233_v58  ;;  %v1273_v57 = vsub.f32 %v2813_v28, %v1233_v58  ;;  %2193 = vpow2.f32 %v1326_v36  ;;  %v1306_v23 = vmul.f32 1.442695, %v1266_v41 }
 0x1fb   : > { %v3171_v20 = vpop.eup %2171  ;;  %2195 = vpow2.f32 %v1328_v32  ;;  %v1298_v46 = vmul.f32 1.442695, %v1262_v18 }
 0x1fc   : > { %v1318_v53 = vmul.f32 1.442695, %v1272_v1  ;;  %v1320_v16 = vmul.f32 1.442695, %v1273_v57  ;;  %v3173_v35 = vpop.eup %2173  ;;  %2197 = vpow2.f32 %v1314_v54  ;;  %v1212_v48 = vpop.xlane.xlu1 %1211 }
 0x1fd   : > { %v1227_v27 = vpop.xlane.xlu0 %1226  ;;  %v3176_v63 = vpop.eup %2175  ;;  %v1399_v42 = vadd.f32 %v3173_v35, %v3171_v20  ;;  %v1258_v30 = vsub.f32 %v2746_v33, %v1212_v48  ;;  %v1259_v54 = vsub.f32 %v2748_v61, %v1212_v48 }
 0x1fe   : > { %v1268_v28 = vsub.f32 %v2783_v9, %v1227_v27  ;;  %v1269_v11 = vsub.f32 %v2789_v3, %v1227_v27  ;;  %2199 = vpow2.f32 %v1318_v53  ;;  %v1263_v9 = vsub.f32 %v2756_v13, %v1218_v44 }
 0x1ff   : > { %v3182_v12 = vpop.eup %2177  ;;  %2201 = vpow2.f32 %v1320_v16  ;;  %1400 = vadd.xlane.f32.xlu0 %v1399_v42  ;;  %v1393_v3 = vadd.f32 %v3164_v8, %v3161_v37  ;;  %v1390_v13 = vadd.f32 %v3176_v63, %v3169_v60  ;;  %v1290_v43 = vmul.f32 1.442695, %v1258_v30 }
 0x200   : > { %v1310_v59 = vmul.f32 1.442695, %v1268_v28  ;;  %v1312_v52 = vmul.f32 1.442695, %v1269_v11  ;;  %v3185_v34 = vpop.eup %2179  ;;  %2203 = vpow2.f32 %v1316_v0 }
 0x201   : > { %v1221_v26 = vpop.xlane.xlu0 %1220  ;;  %v3190_v45 = vpop.eup %2181  ;;  %2205 = vpow2.f32 %v1306_v23  ;;  %v1396_v40 = vadd.f32 %v3185_v34, %v3182_v12 }
 0x202   : > { %v1264_v10 = vsub.f32 %v2760_v17, %v1221_v26  ;;  %v1265_v29 = vsub.f32 %v2765_v21, %v1221_v26  ;;  %v3196_v49 = vpop.eup %2183  ;;  %2207 = vpow2.f32 %v1310_v59  ;;  %v1300_v21 = vmul.f32 1.442695, %v1263_v9 }
 0x203   : > { %v3200_v38 = vpop.eup %2185  ;;  %2209 = vpow2.f32 %v1312_v52  ;;  %1394 = vadd.xlane.f32.xlu0 %v1393_v3  ;;  %1397 = vadd.xlane.f32.xlu1 %v1396_v40  ;;  %v1384_v27 = vadd.f32 %v3196_v49, %v3190_v45 }
 0x204   : > { %v1302_v36 = vmul.f32 1.442695, %v1264_v10  ;;  %v1304_v32 = vmul.f32 1.442695, %v1265_v29  ;;  %v3202_v17 = vpop.eup %2187  ;;  %2211 = vpow2.f32 %v1308_v39 }
 0x205   : > { %v1215_v58 = vpop.xlane.xlu0 %1214  ;;  %v3206_v41 = vpop.eup %2189  ;;  %v1387_v44 = vadd.f32 %v3202_v17, %v3200_v38 }
 0x206   : > { %2213 = vpow2.f32 %v1302_v36  ;;  %v1260_v1 = vsub.f32 %v2750_v2, %v1215_v58  ;;  %v1261_v57 = vsub.f32 %v2752_v6, %v1215_v58  ;;  %v3212_v53 = vpop.eup %2191  ;;  %v1292_v6 = vmul.f32 1.442695, %v1259_v54 }
 0x207   : > { %2215 = vpow2.f32 %v1304_v32  ;;  %v3214_v16 = vpop.eup %2193  ;;  %1391 = vadd.xlane.f32.xlu1 %v1390_v13  ;;  %1388 = vadd.xlane.f32.xlu0 %v1387_v44  ;;  %v1378_v18 = vadd.f32 %v3212_v53, %v3206_v41 }
 0x208   : > { %2217 = vpow2.f32 %v1298_v46  ;;  %v1294_v33 = vmul.f32 1.442695, %v1260_v1  ;;  %v1296_v0 = vmul.f32 1.442695, %v1261_v57  ;;  %v3216_v61 = vpop.eup %2195 }
 0x209   : > { %2219 = vpow2.f32 %v1300_v21  ;;  %v3218_v2 = vpop.eup %2197  ;;  %v1381_v23 = vadd.f32 %v3216_v61, %v3214_v16 }
 0x20a   : > { %2221 = vpow2.f32 %v1294_v33 }
 0x20b   : > { %2223 = vpow2.f32 %v1296_v0  ;;  %v3224_v28 = vpop.eup %2199  ;;  %1385 = vadd.xlane.f32.xlu1 %v1384_v27  ;;  %1382 = vadd.xlane.f32.xlu0 %v1381_v23 }
 0x20c   : > { %v3226_v11 = vpop.eup %2201  ;;  %2225 = vpow2.f32 %v1290_v43 }
 0x20d   : > { %v3228_v42 = vpop.eup %2203  ;;  %2227 = vpow2.f32 %v1292_v6  ;;  %v1375_v59 = vadd.f32 %v3226_v11, %v3224_v28 }
 0x20e   : > { %v3234_v52 = vpop.eup %2205  ;;  %v1372_v3 = vadd.f32 %v3228_v42, %v3218_v2 }
 0x20f   : > { %v3236_v39 = vpop.eup %2207  ;;  %1379 = vadd.xlane.f32.xlu1 %v1378_v18  ;;  %1376 = vadd.xlane.f32.xlu0 %v1375_v59 }
 0x210   : > { %v3238_v9 = vpop.eup %2209 }
 0x211   : > { %v3240_v26 = vpop.eup %2211  ;;  %v1369_v48 = vadd.f32 %v3238_v9, %v3236_v39 }
 0x212   : > { %v1366_v36 = vadd.f32 %v3240_v26, %v3234_v52 }
 0x213   : > { %v3246_v10 = vpop.eup %2213  ;;  %1373 = vadd.xlane.f32.xlu1 %v1372_v3  ;;  %1370 = vadd.xlane.f32.xlu0 %v1369_v48 }
 0x214   : > { %v3248_v29 = vpop.eup %2215 }
 0x215   : > { %v3250_v40 = vpop.eup %2217  ;;  %v1363_v13 = vadd.f32 %v3248_v29, %v3246_v10 }
 0x216   : > { %v3254_v46 = vpop.eup %2219 }
 0x217   : > { %v3258_v32 = vpop.eup %2221  ;;  %1367 = vadd.xlane.f32.xlu1 %v1366_v36  ;;  %1364 = vadd.xlane.f32.xlu0 %v1363_v13  ;;  %v1360_v58 = vadd.f32 %v3254_v46, %v3250_v40 }
 0x218   : > { %v3260_v21 = vpop.eup %2223 }
 0x219   : > { %v1357_v30 = vadd.f32 %v3260_v21, %v3258_v32  ;;  %v3264_v54 = vpop.eup %2225 }
 0x21a   : > { %v3268_v1 = vpop.eup %2227 }
 0x21b   : > { %1361 = vadd.xlane.f32.xlu1 %v1360_v58  ;;  %1358 = vadd.xlane.f32.xlu0 %v1357_v30  ;;  %v1354_v57 = vadd.f32 %v3268_v1, %v3264_v54 }
 0x21f   : > { %1355 = vadd.xlane.f32.xlu1 %v1354_v57  ;;  %v3272_v44 = vpop.f32.mrf.mxu1 }
 0x220   : > { %3658 = vst [vmem:[#allocation30_spill] sm:$0xff] %v3272_v44 }
 0x221   : > { %v3274_v33 = vpop.f32.mrf.mxu1 }
 0x222   : > { %3659 = vst [vmem:[#allocation31_spill] sm:$0xff] %v3274_v33 }
 0x223   : > { %v3276_v0 = vpop.f32.mrf.mxu1 }
 0x224   : > { %3660 = vst [vmem:[#allocation32_spill] sm:$0xff] %v3276_v0 }
 0x225   : > { %v3278_v43 = vpop.f32.mrf.mxu1 }
 0x226   : > { %3661 = vst [vmem:[#allocation33_spill] sm:$0xff] %v3278_v43 }
 0x227   : > { %v3282_v23 = vpop.f32.mrf.mxu1 }
 0x228   : > { %3662 = vst [vmem:[#allocation34_spill] sm:$0xff] %v3282_v23 }
 0x229   : > { %v3284_v18 = vpop.f32.mrf.mxu1 }
 0x22a   : > { %3663 = vst [vmem:[#allocation35_spill] sm:$0xff] %v3284_v18 }
 0x22b   : > { %v3286_v59 = vpop.f32.mrf.mxu1 }
 0x22c   : > { %3664 = vst [vmem:[#allocation36_spill] sm:$0xff] %v3286_v59 }
 0x22d   : > { %v3288_v3 = vpop.f32.mrf.mxu1 }
 0x22e   : > { %3665 = vst [vmem:[#allocation37_spill] sm:$0xff] %v3288_v3 }
 0x22f   : > { %v3290_v48 = vpop.f32.mrf.mxu1 }
 0x230   : > { %3666 = vst [vmem:[#allocation38_spill] sm:$0xff] %v3290_v48 }
 0x231   : > { %v3292_v13 = vpop.f32.mrf.mxu1 }
 0x233   : > { %v3294_v36 = vpop.f32.mrf.mxu1 }
 0x235   : > { %v3296_v30 = vpop.f32.mrf.mxu1 }
 0x237   : > { %v3298_v58 = vpop.f32.mrf.mxu1 }
 0x239   : > { %v3300_v57 = vpop.f32.mrf.mxu1 }
 0x240   : > { %v3280_v6 = vpop.f32.mrf.mxu0 }
 0x242   : > { %v754_v27 = vpop.f32.mrf.mxu0 }
 0x243   : > { %1514 = vmatprep.mubr.f32.mxu1 %v754_v27  ;;  %v3302_v27 = vpop.f32.mrf.mxu1 }
 0x245   : > { %v3304_v47 = vpop.f32.mrf.mxu1 }
 0x247   : > { %v3306_v44 = vpop.f32.mrf.mxu1 }
 0x248   : > { %v3322_v56 = vpop.f32.mrf.mxu0 }
 0x249   : > { %v3308_v33 = vpop.f32.mrf.mxu1 }
 0x24b   : > { %v3310_v50 = vpop.f32.mrf.mxu1 }
 0x24d   : > { %v3312_v51 = vpop.f32.mrf.mxu1 }
 0x24f   : > { %v3314_v18 = vpop.f32.mrf.mxu1 }
 0x251   : > { %v3318_v55 = vpop.f32.mrf.mxu1 }
 0x288   : > { %v1401_v15 = vpop.xlane.xlu0 %1400 }
 0x289   : > { %2229 = vrcp.f32 %v1401_v15 }
 0x28c   : > { %v1398_v31 = vpop.xlane.xlu1 %1397  ;;  %v1395_v0 = vpop.xlane.xlu0 %1394 }
 0x28d   : > { %2231 = vrcp.f32 %v1398_v31 }
 0x28e   : > { %2233 = vrcp.f32 %v1395_v0 }
 0x290   : > { %v1392_v43 = vpop.xlane.xlu1 %1391  ;;  %v1389_v23 = vpop.xlane.xlu0 %1388 }
 0x291   : > { %2235 = vrcp.f32 %v1392_v43 }
 0x292   : > { %2237 = vrcp.f32 %v1389_v23 }
 0x294   : > { %v1386_v22 = vpop.xlane.xlu1 %1385  ;;  %v1383_v0 = vpop.xlane.xlu0 %1382 }
 0x295   : > { %2239 = vrcp.f32 %v1386_v22 }
 0x296   : > { %v2230_v25 = vpop.eup %2229  ;;  %2241 = vrcp.f32 %v1383_v0 }
 0x297   : > { %v1449_v15 = vmul.f32 %v2230_v25, %v3173_v35  ;;  %v1448_v59 = vmul.f32 %v2230_v25, %v3171_v20  ;;  %v3325_v25 = vpop.f32.mrf.mxu1  ;;  %v3327_v20 = vpop.f32.mrf.mxu0 }
 0x298   : > { %v1380_v22 = vpop.xlane.xlu1 %1379 }
 0x299   : > { %1450 = vmatprep.subr.mxu1 %v1449_v15  ;;  %2243 = vrcp.f32 %v1380_v22  ;;  %v3331_v15 = vpop.f32.mrf.mxu1 }
 0x29a   : > { %v2232_v31 = vpop.eup %2231  ;;  %1451 = vmatpush1.xpose.msra.mxu1 %v1448_v59 }
 0x29b   : > { %v2234_v43 = vpop.eup %2233  ;;  %v1447_v3 = vmul.f32 %v2232_v31, %v3185_v34  ;;  %v1446_v23 = vmul.f32 %v2232_v31, %v3182_v12  ;;  %v1377_v31 = vpop.xlane.xlu0 %1376 }
 0x29c   : > { %v1445_v35 = vmul.f32 %v2234_v43, %v3164_v8  ;;  %v1444_v59 = vmul.f32 %v2234_v43, %v3161_v37  ;;  %v3333_v8 = vpop.f32.mrf.mxu0  ;;  %2245 = vrcp.f32 %v1377_v31  ;;  %v1374_v37 = vpop.xlane.xlu1 %1373 }
 0x29d   : > { %1452 = vmatprep.subr.mxu1 %v1447_v3  ;;  %2247 = vrcp.f32 %v1374_v37 }
 0x29e   : > { %v2236_v48 = vpop.eup %2235  ;;  %1453 = vmatpush1.xpose.msra.mxu1 %v1446_v23 }
 0x29f   : > { %1454 = vmatprep.subr.mxu1 %v1445_v35  ;;  %v1443_v34 = vmul.f32 %v2236_v48, %v3176_v63  ;;  %v2238_v12 = vpop.eup %2237  ;;  %v1442_v3 = vmul.f32 %v2236_v48, %v3169_v60  ;;  %v3337_v35 = vpop.f32.mrf.mxu1 }
 0x2a0   : > { %v1441_v0 = vmul.f32 %v2238_v12, %v3202_v17  ;;  %v3339_v63 = vpop.f32.mrf.mxu0  ;;  %v1440_v43 = vmul.f32 %v2238_v12, %v3200_v38  ;;  %v1371_v60 = vpop.xlane.xlu0 %1370 }
 0x2a1   : > { %2249 = vrcp.f32 %v1371_v60  ;;  %v1368_v38 = vpop.xlane.xlu1 %1367 }
 0x2a2   : > { %1455 = vmatpush1.xpose.msra.mxu1 %v1444_v59  ;;  %v2240_v23 = vpop.eup %2239  ;;  %v3345_v17 = vpop.f32.mrf.mxu0  ;;  %2251 = vrcp.f32 %v1368_v38 }
 0x2a3   : > { %1456 = vmatprep.subr.mxu1 %v1443_v34  ;;  %v1439_v22 = vmul.f32 %v2240_v23, %v3196_v49  ;;  %v2242_v59 = vpop.eup %2241  ;;  %v3343_v34 = vpop.f32.mrf.mxu1  ;;  %3667 = vst [vmem:[#allocation39_spill] sm:$0xff] %v3345_v17  ;;  %v1438_v48 = vmul.f32 %v2240_v23, %v3190_v45 }
 0x2a4   : > { %v1437_v31 = vmul.f32 %v2242_v59, %v3216_v61  ;;  %v3351_v49 = vpop.f32.mrf.mxu0  ;;  %v1436_v12 = vmul.f32 %v2242_v59, %v3214_v16  ;;  %v1365_v17 = vpop.xlane.xlu0 %1364 }
 0x2a5   : > { %2253 = vrcp.f32 %v1365_v17 }
 0x2a6   : > { %1457 = vmatpush1.xpose.msra.mxu1 %v1442_v3  ;;  %v2244_v3 = vpop.eup %2243  ;;  %v3355_v45 = vpop.f32.mrf.mxu0 }
 0x2a7   : > { %1458 = vmatprep.subr.mxu1 %v1441_v0  ;;  %v3349_v0 = vpop.f32.mrf.mxu1  ;;  %v1435_v37 = vmul.f32 %v2244_v3, %v3212_v53  ;;  %v1434_v61 = vmul.f32 %v2244_v3, %v3206_v41 }
 0x2a8   : > { %v3359_v16 = vpop.f32.mrf.mxu0 }
 0x2aa   : > { %1459 = vmatpush1.xpose.msra.mxu1 %v1440_v43  ;;  %v2246_v43 = vpop.eup %2245  ;;  %v3363_v41 = vpop.f32.mrf.mxu0 }
 0x2ab   : > { %1460 = vmatprep.subr.mxu1 %v1439_v22  ;;  %v1131_v22 = vpop.f32.mrf.mxu1  ;;  %v1433_v23 = vmul.f32 %v2246_v43, %v3226_v11  ;;  %v2248_v60 = vpop.eup %2247  ;;  %v1432_v53 = vmul.f32 %v2246_v43, %v3224_v28 }
 0x2ac   : > { %v1431_v59 = vmul.f32 %v2248_v60, %v3228_v42  ;;  %v1430_v11 = vmul.f32 %v2248_v60, %v3218_v2  ;;  %v3367_v28 = vpop.f32.mrf.mxu0 }
 0x2ae   : > { %1461 = vmatpush1.xpose.msra.mxu1 %v1438_v48  ;;  %v1135_v48 = vpop.f32.mrf.mxu1  ;;  %v2250_v38 = vpop.eup %2249 }
 0x2af   : > { %1462 = vmatprep.subr.mxu1 %v1437_v31  ;;  %v1362_v31 = vpop.xlane.xlu1 %1361  ;;  %v1429_v17 = vmul.f32 %v2250_v38, %v3238_v9  ;;  %v2252_v3 = vpop.eup %2251  ;;  %v1428_v42 = vmul.f32 %v2250_v38, %v3236_v39 }
 0x2b0   : > { %2255 = vrcp.f32 %v1362_v31  ;;  %v1427_v43 = vmul.f32 %v2252_v3, %v3240_v26  ;;  %v3371_v2 = vpop.f32.mrf.mxu0  ;;  %v1426_v9 = vmul.f32 %v2252_v3, %v3234_v52  ;;  %v3674_v3 = vld [vmem:[#allocation35_spill] sm:$0xff] }
 0x2b2   : > { %1463 = vmatpush1.xpose.msra.mxu1 %v1436_v12  ;;  %v1137_v12 = vpop.f32.mrf.mxu1  ;;  %v2254_v31 = vpop.eup %2253 }
 0x2b3   : > { %1464 = vmatprep.subr.mxu1 %v1435_v37  ;;  %v1359_v37 = vpop.xlane.xlu0 %1358  ;;  %v1425_v60 = vmul.f32 %v2254_v31, %v3248_v29  ;;  %v1424_v39 = vmul.f32 %v2254_v31, %v3246_v10 }
 0x2b4   : > { %2257 = vrcp.f32 %v1359_v37  ;;  %v3375_v37 = vpop.f32.mrf.mxu0 }
 0x2b6   : > { %1465 = vmatpush1.xpose.msra.mxu1 %v1434_v61  ;;  %v1141_v61 = vpop.f32.mrf.mxu1  ;;  %v3379_v52 = vpop.f32.mrf.mxu0 }
 0x2b7   : > { %1466 = vmatprep.subr.mxu1 %v1433_v23  ;;  %v1356_v23 = vpop.xlane.xlu1 %1355 }
 0x2b8   : > { %2259 = vrcp.f32 %v1356_v23  ;;  %v3387_v10 = vpop.f32.mrf.mxu0 }
 0x2ba   : > { %1467 = vmatpush1.xpose.msra.mxu1 %v1432_v53  ;;  %v1143_v53 = vpop.f32.mrf.mxu1 }
 0x2bb   : > { %1468 = vmatprep.subr.mxu1 %v1431_v59  ;;  %2261 = vrcp.f32 %v1143_v53 }
 0x2bc   : > { %2263 = vrcp.f32 %v1141_v61 }
 0x2bd   : > { %v2256_v59 = vpop.eup %2255  ;;  %2265 = vrcp.f32 %v1137_v12 }
 0x2be   : > { %1469 = vmatpush1.xpose.msra.mxu1 %v1430_v11  ;;  %v1423_v26 = vmul.f32 %v2256_v59, %v3254_v46  ;;  %2267 = vrcp.f32 %v1135_v48  ;;  %v1422_v29 = vmul.f32 %v2256_v59, %v3250_v40 }
 0x2bf   : > { %1470 = vmatprep.subr.mxu1 %v1429_v17  ;;  %2269 = vrcp.f32 %v1131_v22  ;;  %v3672_v22 = vld [vmem:[#allocation36_spill] sm:$0xff] }
 0x2c0   : > { %2271 = vrcp.f32 %v3349_v0 }
 0x2c1   : > { %v2258_v38 = vpop.eup %2257  ;;  %2273 = vrcp.f32 %v3343_v34 }
 0x2c2   : > { %1471 = vmatpush1.xpose.msra.mxu1 %v1428_v42  ;;  %v1421_v11 = vmul.f32 %v2258_v38, %v3260_v21  ;;  %2275 = vrcp.f32 %v3337_v35  ;;  %v1420_v46 = vmul.f32 %v2258_v38, %v3258_v32  ;;  %v3395_v21 = vpop.f32.mrf.mxu0  ;;  %v3670_v35 = vld [vmem:[#allocation37_spill] sm:$0xff]  ;;  %v3676_v42 = vld [vmem:[#allocation34_spill] sm:$0xff]  ;;  %v3681_v38 = vld [vmem:[#allocation11_spill] sm:$0xff] }
 0x2c3   : > { %1472 = vmatprep.subr.mxu1 %v1427_v43  ;;  %2277 = vrcp.f32 %v3331_v15  ;;  %v3677_v43 = vld [vmem:[#allocation9_spill] sm:$0xff] }
 0x2c4   : > { %2279 = vrcp.f32 %v3325_v25 }
 0x2c5   : > { %v2260_v17 = vpop.eup %2259  ;;  %2281 = vrcp.f32 %v3318_v55 }
 0x2c6   : > { %1473 = vmatpush1.xpose.msra.mxu1 %v1426_v9  ;;  %v1419_v40 = vmul.f32 %v2260_v17, %v3268_v1  ;;  %2283 = vrcp.f32 %v3314_v18  ;;  %v1418_v15 = vmul.f32 %v2260_v17, %v3264_v54  ;;  %v3678_v9 = vld [vmem:[#allocation33_spill] sm:$0xff]  ;;  %v3682_v17 = vld [vmem:[#allocation31_spill] sm:$0xff] }
 0x2c7   : > { %1474 = vmatprep.subr.mxu1 %v1425_v60  ;;  %2285 = vrcp.f32 %v3312_v51  ;;  %v3403_v51 = vpop.f32.mrf.mxu0  ;;  %v3679_v60 = vld [vmem:[#allocation10_spill] sm:$0xff] }
 0x2c8   : > { %v2262_v34 = vpop.eup %2261  ;;  %2287 = vrcp.f32 %v3310_v50 }
 0x2c9   : > { %v2264_v25 = vpop.eup %2263  ;;  %2289 = vrcp.f32 %v3308_v33  ;;  %v1209_v55 = vmul.f32 %v2262_v34, %v2819_v24 }
 0x2ca   : > { %1475 = vmatpush1.xpose.msra.mxu1 %v1424_v39  ;;  %v2266_v32 = vpop.eup %2265  ;;  %2291 = vrcp.f32 %v3306_v44  ;;  %v1208_v50 = vmul.f32 %v2264_v25, %v2825_v14  ;;  %v3686_v25 = vld [vmem:[#allocation13_spill] sm:$0xff] }
 0x2cb   : > { %1476 = vmatprep.subr.mxu1 %v1423_v26  ;;  %v2268_v1 = vpop.eup %2267  ;;  %2293 = vrcp.f32 %v3304_v47  ;;  %v1207_v24 = vmul.f32 %v2266_v32, %v2830_v19  ;;  %v3680_v26 = vld [vmem:[#allocation32_spill] sm:$0xff] }
 0x2cc   : > { %v2270_v18 = vpop.eup %2269  ;;  %2295 = vrcp.f32 %v3302_v27  ;;  %v1206_v47 = vmul.f32 %v2268_v1, %v2837_v4  ;;  %v3415_v27 = vpop.f32.mrf.mxu0  ;;  %v3687_v1 = vld [vmem:[#allocation14_spill] sm:$0xff] }
 0x2cd   : > { %v2272_v54 = vpop.eup %2271  ;;  %2297 = vrcp.f32 %v3300_v57  ;;  %v1205_v14 = vmul.f32 %v2270_v18, %v2842_v62  ;;  %v3669_v62 = vld [vmem:[#allocation5_spill] sm:$0xff] }
 0x2ce   : > { %1477 = vmatpush1.xpose.msra.mxu1 %v1422_v29  ;;  %v2274_v44 = vpop.eup %2273  ;;  %2299 = vrcp.f32 %v3298_v58  ;;  %v1204_v19 = vmul.f32 %v2272_v54, %v2849_v5  ;;  %v3668_v58 = vld [vmem:[#allocation38_spill] sm:$0xff] }
 0x2cf   : > { %1478 = vmatprep.subr.mxu1 %v1421_v11  ;;  %v2276_v33 = vpop.eup %2275  ;;  %2301 = vrcp.f32 %v3296_v30  ;;  %v1203_v4 = vmul.f32 %v2274_v44, %v2854_v7  ;;  %v3671_v5 = vld [vmem:[#allocation6_spill] sm:$0xff]  ;;  %v3673_v7 = vld [vmem:[#allocation7_spill] sm:$0xff] }
 0x2d0   : > { %v2278_v57 = vpop.eup %2277  ;;  %2303 = vrcp.f32 %v3294_v36 }
 0x2d1   : > { %2305 = vrcp.f32 %v3292_v13  ;;  %v1201_v0 = vmul.f32 %v2278_v57, %v3671_v5  ;;  %v3427_v13 = vpop.f32.mrf.mxu0 }
 0x2d2   : > { %1479 = vmatpush1.xpose.msra.mxu1 %v1420_v46  ;;  %2307 = vrcp.f32 %v3668_v58  ;;  %v3684_v46 = vld [vmem:[#allocation12_spill] sm:$0xff] }
 0x2d3   : > { %1480 = vmatprep.subr.mxu1 %v1419_v40  ;;  %2309 = vrcp.f32 %v3670_v35  ;;  %v3439_v39 = vpop.f32.mrf.mxu0 }
 0x2d6   : > { %1481 = vmatpush1.xpose.msra.mxu1 %v1418_v15  ;;  %v3685_v15 = vld [vmem:[#allocation30_spill] sm:$0xff] }
 0x2d7   : > { %1611 = vmatprep.subr.mxu1 %v1209_v55 }
 0x2d9   : > { %1515 = vmatmul.mubr.f32.vlgmr.msra.gmra.mxu1 %v3280_v6  ;;  %v2280_v6 = vpop.eup %2279  ;;  %2311 = vrcp.f32 %v3672_v22 }
 0x2da   : > { %1519 = vmatprep.mubr.f32.mxu1 %v3327_v20  ;;  %1612 = vmatpush1.msra.mxu1 %v1208_v50  ;;  %v2282_v30 = vpop.eup %2281  ;;  %v1202_v20 = vmul.f32 %v2276_v33, %v3669_v62  ;;  %v1200_v48 = vmul.f32 %v2280_v6, %v3673_v7  ;;  %2313 = vrcp.f32 %v3674_v3  ;;  %v814_v50 = vpop.f32.mrf.mxu0  ;;  %v3689_v33 = vld [vmem:[#allocation16_spill] sm:$0xff]  ;;  %v3695_v7 = vld [vmem:[#allocation22_spill] sm:$0xff] }
 0x2db   : > { %1613 = vmatprep.subr.mxu1 %v1207_v24  ;;  %v2284_v36 = vpop.eup %2283  ;;  %2315 = vrcp.f32 %v3676_v42  ;;  %v3688_v24 = vld [vmem:[#allocation15_spill] sm:$0xff] }
 0x2dc   : > { %1614 = vmatpush1.msra.mxu1 %v1206_v47  ;;  %v1198_v31 = vmul.f32 %v2284_v36, %v3677_v43  ;;  %v818_v58 = vpop.f32.mrf.mxu0 }
 0x2dd   : > { %1520 = vmatmul.mubr.f32.gmra.mxu1 %v3322_v56  ;;  %1615 = vmatprep.subr.mxu1 %v1205_v14  ;;  %v2286_v56 = vpop.eup %2285  ;;  %2317 = vrcp.f32 %v3678_v9  ;;  %v3699_v9 = vld [vmem:[#allocation26_spill] sm:$0xff] }
 0x2de   : > { %1524 = vmatprep.mubr.f32.mxu1 %v3339_v63  ;;  %1616 = vmatpush1.msra.mxu1 %v1204_v19  ;;  %v2288_v12 = vpop.eup %2287  ;;  %v3675_v63 = vld [vmem:[#allocation8_spill] sm:$0xff]  ;;  %v1197_v59 = vmul.f32 %v2286_v56, %v3679_v60  ;;  %2319 = vrcp.f32 %v3680_v26 }
 0x2df   : > { %1617 = vmatprep.subr.mxu1 %v1203_v4  ;;  %v1199_v61 = vmul.f32 %v2282_v30, %v3675_v63  ;;  %v2290_v23 = vpop.eup %2289  ;;  %v1196_v29 = vmul.f32 %v2288_v12, %v3681_v38  ;;  %2321 = vrcp.f32 %v3682_v17  ;;  %v3691_v4 = vld [vmem:[#allocation18_spill] sm:$0xff]  ;;  %v820_v12 = vpop.f32.mrf.mxu0  ;;  %v3696_v63 = vld [vmem:[#allocation23_spill] sm:$0xff] }
 0x2e0   : > { %1618 = vmatpush1.msra.mxu1 %v1202_v20  ;;  %v2292_v53 = vpop.eup %2291  ;;  %v1195_v40 = vmul.f32 %v2290_v23, %v3684_v46  ;;  %2323 = vrcp.f32 %v3685_v15  ;;  %v3692_v20 = vld [vmem:[#allocation19_spill] sm:$0xff] }
 0x2e1   : > { %1525 = vmatmul.mubr.f32.gmra.mxu1 %v3333_v8  ;;  %1619 = vmatprep.subr.mxu1 %v1201_v0  ;;  %v2294_v8 = vpop.eup %2293  ;;  %v1194_v55 = vmul.f32 %v2292_v53, %v3686_v25  ;;  %v2328_v25 = vld [vmem:[%s3597_s3 + $0x8] sm:$0xff] }
 0x2e2   : > { %1529 = vmatprep.mubr.f32.mxu1 %v3351_v49  ;;  %1620 = vmatpush1.msra.mxu1 %v1200_v48  ;;  %v2296_v11 = vpop.eup %2295  ;;  %v3683_v49 = vld [vmem:[#allocation39_spill] sm:$0xff]  ;;  %v1193_v18 = vmul.f32 %v2294_v8, %v3687_v1 }
 0x2e3   : > { %1621 = vmatprep.subr.mxu1 %v1199_v61  ;;  %v2298_v34 = vpop.eup %2297  ;;  %v1192_v44 = vmul.f32 %v2296_v11, %v3688_v24  ;;  %v3700_v8 = vld [vmem:[#allocation27_spill] sm:$0xff] }
 0x2e4   : > { %1622 = vmatpush1.msra.mxu1 %v1198_v31  ;;  %v2300_v32 = vpop.eup %2299  ;;  %v1191_v14 = vmul.f32 %v2298_v34, %v3689_v33 }
 0x2e5   : > { %1530 = vmatmul.mubr.f32.gmra.mxu1 %v3683_v49  ;;  %1623 = vmatprep.subr.mxu1 %v1197_v59  ;;  %v2302_v54 = vpop.eup %2301  ;;  %v824_v59 = vpop.f32.mrf.mxu0 }
 0x2e6   : > { %1534 = vmatprep.mubr.f32.mxu1 %v3359_v16  ;;  %1624 = vmatpush1.msra.mxu1 %v1196_v29  ;;  %v2304_v47 = vpop.eup %2303  ;;  %v3690_v16 = vld [vmem:[#allocation17_spill] sm:$0xff]  ;;  %v1189_v30 = vmul.f32 %v2302_v54, %v3691_v4  ;;  %v2332_v4 = vld [vmem:[%s3597_s3 + $0x28] sm:$0xff] }
 0x2e7   : > { %1625 = vmatprep.subr.mxu1 %v1195_v40  ;;  %v2306_v57 = vpop.eup %2305  ;;  %v1190_v19 = vmul.f32 %v2300_v32, %v3690_v16  ;;  %v1188_v36 = vmul.f32 %v2304_v47, %v3692_v20  ;;  %v826_v11 = vpop.f32.mrf.mxu0  ;;  %v2333_v20 = vld [vmem:[%s3597_s3 + $0x30] sm:$0xff] }
 0x2e8   : > { %1626 = vmatpush1.msra.mxu1 %v1194_v55  ;;  %v2308_v6 = vpop.eup %2307 }
 0x2e9   : > { %1535 = vmatmul.mubr.f32.gmra.mxu1 %v3355_v45  ;;  %1627 = vmatprep.subr.mxu1 %v1193_v18  ;;  %v2310_v62 = vpop.eup %2309  ;;  %v3693_v45 = vld [vmem:[#allocation20_spill] sm:$0xff]  ;;  %v830_v17 = vpop.f32.mrf.mxu0  ;;  %v2329_v18 = vld [vmem:[%s3597_s3 + $0x10] sm:$0xff] }
 0x2ea   : > { %1539 = vmatprep.mubr.f32.mxu1 %v3367_v28  ;;  %1628 = vmatpush1.msra.mxu1 %v1192_v44  ;;  %v2312_v35 = vpop.eup %2311  ;;  %v1187_v5 = vmul.f32 %v2306_v57, %v3693_v45  ;;  %v3694_v28 = vld [vmem:[#allocation21_spill] sm:$0xff]  ;;  %v1185_v48 = vmul.f32 %v2310_v62, %v3695_v7  ;;  %v2330_v44 = vld [vmem:[%s3597_s3 + $0x18] sm:$0xff]  ;;  %v2331_v57 = vld [vmem:[%s3597_s3 + $0x20] sm:$0xff] }
 0x2eb   : > { %1629 = vmatprep.subr.mxu1 %v1191_v14  ;;  %v2314_v0 = vpop.eup %2313  ;;  %v1186_v56 = vmul.f32 %v2308_v6, %v3694_v28  ;;  %v1184_v61 = vmul.f32 %v2312_v35, %v3696_v63 }
 0x2ec   : > { %1630 = vmatpush1.msra.mxu1 %v1190_v19  ;;  %v2316_v22 = vpop.eup %2315 }
 0x2ed   : > { %1540 = vmatmul.mubr.f32.gmra.mxu1 %v3363_v41  ;;  %1631 = vmatprep.subr.mxu1 %v1189_v30  ;;  %v2318_v3 = vpop.eup %2317  ;;  %v3697_v41 = vld [vmem:[#allocation24_spill] sm:$0xff] }
 0x2ee   : > { %1544 = vmatprep.mubr.f32.mxu1 %v3375_v37  ;;  %1632 = vmatpush1.msra.mxu1 %v1188_v36  ;;  %v2320_v23 = vpop.eup %2319  ;;  %v1183_v42 = vmul.f32 %v2314_v0, %v3697_v41  ;;  %v3698_v37 = vld [vmem:[#allocation25_spill] sm:$0xff]  ;;  %v1181_v60 = vmul.f32 %v2318_v3, %v3699_v9  ;;  %v2336_v3 = vld [vmem:[%s3597_s3 + $0x48] sm:$0xff] }
 0x2ef   : > { %1633 = vmatprep.subr.mxu1 %v1187_v5  ;;  %v2322_v43 = vpop.eup %2321  ;;  %v1182_v31 = vmul.f32 %v2316_v22, %v3698_v37  ;;  %v1180_v26 = vmul.f32 %v2320_v23, %v3700_v8  ;;  %v2334_v5 = vld [vmem:[%s3597_s3 + $0x38] sm:$0xff]  ;;  %v2335_v22 = vld [vmem:[%s3597_s3 + $0x40] sm:$0xff]  ;;  %v2337_v41 = vld [vmem:[%s3597_s3 + $0x50] sm:$0xff] }
 0x2f0   : > { %1634 = vmatpush1.msra.mxu1 %v1186_v56  ;;  %v2324_v53 = vpop.eup %2323 }
 0x2f1   : > { %1545 = vmatmul.mubr.f32.gmra.mxu1 %v3371_v2  ;;  %1635 = vmatprep.subr.mxu1 %v1185_v48  ;;  %v3701_v2 = vld [vmem:[#allocation28_spill] sm:$0xff] }
 0x2f2   : > { %1549 = vmatprep.mubr.f32.mxu1 %v3387_v10  ;;  %1636 = vmatpush1.msra.mxu1 %v1184_v61  ;;  %v1179_v38 = vmul.f32 %v2322_v43, %v3701_v2  ;;  %v3702_v10 = vld [vmem:[#allocation29_spill] sm:$0xff] }
 0x2f3   : > { %1637 = vmatprep.subr.mxu1 %v1183_v42  ;;  %v1178_v29 = vmul.f32 %v2324_v53, %v3702_v10 }
 0x2f4   : > { %1638 = vmatpush1.msra.mxu1 %v1182_v31  ;;  %v2338_v31 = vld [vmem:[%s3597_s3 + $0x58] sm:$0xff] }
 0x2f5   : > { %1550 = vmatmul.mubr.f32.gmra.mxu1 %v3379_v52  ;;  %1639 = vmatprep.subr.mxu1 %v1181_v60  ;;  %v832_v52 = vpop.f32.mrf.mxu0 }
 0x2f6   : > { %1554 = vmatprep.mubr.f32.mxu1 %v3403_v51  ;;  %1640 = vmatpush1.msra.mxu1 %v1180_v26 }
 0x2f7   : > { %1641 = vmatprep.subr.mxu1 %v1179_v38  ;;  %v836_v49 = vpop.f32.mrf.mxu0  ;;  %v2340_v38 = vld [vmem:[%s3597_s3 + $0x68] sm:$0xff] }
 0x2f8   : > { %1642 = vmatpush1.msra.mxu1 %v1178_v29 }
 0x2f9   : > { %1555 = vmatmul.mubr.f32.gmra.mxu1 %v3395_v21  ;;  %v838_v51 = vpop.f32.mrf.mxu0 }
 0x2fa   : > { %1559 = vmatprep.mubr.f32.mxu1 %v3427_v13  ;;  %v3703_v13 = vmov 0.0  }
 0x2fb   : > { %v842_v46 = vpop.f32.mrf.mxu0 }
 0x2fd   : > { %1560 = vmatmul.mubr.f32.gmra.mxu1 %v3415_v27  ;;  %v844_v21 = vpop.f32.mrf.mxu0 }
 0x2fe   : > { %1564 = vmatprep.mubr.f32.mxu1 %v814_v50 }
 0x301   : > { %1565 = vmatmul.mubr.f32.gmra.mxu1 %v3439_v39  ;;  %v2327_v39 = vld [vmem:[%s3597_s3] sm:$0xff] }
 0x302   : > { %1569 = vmatprep.mubr.f32.mxu1 %v820_v12 }
 0x305   : > { %1570 = vmatmul.mubr.f32.gmra.mxu1 %v818_v58 }
 0x306   : > { %1574 = vmatprep.mubr.f32.mxu1 %v826_v11 }
 0x309   : > { %1575 = vmatmul.mubr.f32.gmra.mxu1 %v824_v59  ;;  %v2339_v59 = vld [vmem:[%s3597_s3 + $0x60] sm:$0xff] }
 0x30a   : > { %1579 = vmatprep.mubr.f32.mxu1 %v832_v52 }
 0x30d   : > { %1580 = vmatmul.mubr.f32.gmra.mxu1 %v830_v17  ;;  %v2341_v17 = vld [vmem:[%s3597_s3 + $0x70] sm:$0xff] }
 0x30e   : > { %1584 = vmatprep.mubr.f32.mxu1 %v838_v51 }
 0x311   : > { %1585 = vmatmul.mubr.f32.gmra.mxu1 %v836_v49 }
 0x312   : > { %1589 = vmatprep.mubr.f32.mxu1 %v844_v21 }
 0x315   : > { %1590 = vmatmul.mubr.f32.gmra.mxu1 %v842_v46  ;;  %v2342_v46 = vld [vmem:[%s3597_s3 + $0x78] sm:$0xff] }
 0x316   : > { %1675 = vmatprep.mubr.f32.mxu1 %v3703_v13 }
 0x399   : > { %v1516_v27 = vpop.f32.mrf.mxu1 }
 0x39a   : > { %v1595_v40 = vmul.f32 %v2327_v39, %v1516_v27  ;;  %v1773_v39 = vld [vmem:[%s3598_s4] sm:$0xf] }
 0x39b   : > { %v1518_v34 = vpop.f32.mrf.mxu1 }
 0x39c   : > { %1676 = vmatmul.mubr.f32.vlgmr.msra.gmra.mxu1 %v1595_v40  ;;  %v2406_v40 = vmov 0  }
 0x39d   : > { %v1521_v15 = vpop.f32.mrf.mxu1  ;;  %1681 = vmatprep.mubr.f32.mxu1 %v3703_v13  ;;  %2098 = vset.pattern.permute.xlu0 %v2406_v40 }
 0x39e   : > { %v1596_v55 = vmul.f32 %v2328_v25, %v1521_v15  ;;  %2099 = vset.pattern.permute.xlu1 %v2406_v40  ;;  %1776 = vperm.xlu0 %2098, %v1773_v39  }
 0x39f   : > { %v1523_v32 = vpop.f32.mrf.mxu1 }
 0x3a0   : > { %1682 = vmatmul.mubr.f32.gmra.mxu1 %v1596_v55 }
 0x3a1   : > { %v1526_v1 = vpop.f32.mrf.mxu1  ;;  %1687 = vmatprep.mubr.f32.mxu1 %v3703_v13 }
 0x3a2   : > { %v1597_v50 = vmul.f32 %v2329_v18, %v1526_v1 }
 0x3a3   : > { %v1528_v54 = vpop.f32.mrf.mxu1 }
 0x3a4   : > { %1688 = vmatmul.mubr.f32.gmra.mxu1 %v1597_v50 }
 0x3a5   : > { %v1531_v24 = vpop.f32.mrf.mxu1  ;;  %1693 = vmatprep.mubr.f32.mxu1 %v3703_v13 }
 0x3a6   : > { %v1598_v47 = vmul.f32 %v2330_v44, %v1531_v24 }
 0x3a7   : > { %v1533_v33 = vpop.f32.mrf.mxu1 }
 0x3a8   : > { %1694 = vmatmul.mubr.f32.gmra.mxu1 %v1598_v47 }
 0x3a9   : > { %v1536_v14 = vpop.f32.mrf.mxu1  ;;  %1699 = vmatprep.mubr.f32.mxu1 %v3703_v13 }
 0x3aa   : > { %v1599_v16 = vmul.f32 %v2331_v57, %v1536_v14 }
 0x3ab   : > { %v1538_v19 = vpop.f32.mrf.mxu1 }
 0x3ac   : > { %1700 = vmatmul.mubr.f32.gmra.mxu1 %v1599_v16 }
 0x3ad   : > { %v1541_v6 = vpop.f32.mrf.mxu1  ;;  %1705 = vmatprep.mubr.f32.mxu1 %v3703_v13 }
 0x3ae   : > { %v1600_v30 = vmul.f32 %v2332_v4, %v1541_v6 }
 0x3af   : > { %v1543_v58 = vpop.f32.mrf.mxu1 }
 0x3b0   : > { %1706 = vmatmul.mubr.f32.gmra.mxu1 %v1600_v30 }
 0x3b1   : > { %v1546_v62 = vpop.f32.mrf.mxu1  ;;  %1711 = vmatprep.mubr.f32.mxu1 %v3703_v13 }
 0x3b2   : > { %v1601_v36 = vmul.f32 %v2333_v20, %v1546_v62 }
 0x3b3   : > { %v1548_v35 = vpop.f32.mrf.mxu1 }
 0x3b4   : > { %1712 = vmatmul.mubr.f32.gmra.mxu1 %v1601_v36 }
 0x3b5   : > { %v1551_v45 = vpop.f32.mrf.mxu1  ;;  %1717 = vmatprep.mubr.f32.mxu1 %v3703_v13 }
 0x3b6   : > { %v1602_v0 = vmul.f32 %v2334_v5, %v1551_v45 }
 0x3b7   : > { %v1553_v28 = vpop.f32.mrf.mxu1 }
 0x3b8   : > { %1718 = vmatmul.mubr.f32.gmra.mxu1 %v1602_v0 }
 0x3b9   : > { %v1556_v56 = vpop.f32.mrf.mxu1  ;;  %1723 = vmatprep.mubr.f32.mxu1 %v3703_v13 }
 0x3ba   : > { %v1603_v7 = vmul.f32 %v2335_v22, %v1556_v56 }
 0x3bb   : > { %v1558_v48 = vpop.f32.mrf.mxu1 }
 0x3bc   : > { %1724 = vmatmul.mubr.f32.gmra.mxu1 %v1603_v7  ;;  %v1772_v7 = vld [vmem:[%s3596_s2] sm:$0xf] }
 0x3bd   : > { %v1561_v12 = vpop.f32.mrf.mxu1  ;;  %1729 = vmatprep.mubr.f32.mxu1 %v3703_v13 }
 0x3be   : > { %v1604_v63 = vmul.f32 %v2336_v3, %v1561_v12 }
 0x3bf   : > { %v1563_v61 = vpop.f32.mrf.mxu1 }
 0x3c0   : > { %1730 = vmatmul.mubr.f32.gmra.mxu1 %v1604_v63 }
 0x3c1   : > { %v1566_v23 = vpop.f32.mrf.mxu1  ;;  %1735 = vmatprep.mubr.f32.mxu1 %v3703_v13 }
 0x3c2   : > { %v1605_v42 = vmul.f32 %v2337_v41, %v1566_v23 }
 0x3c3   : > { %v1568_v43 = vpop.f32.mrf.mxu1 }
 0x3c4   : > { %1736 = vmatmul.mubr.f32.gmra.mxu1 %v1605_v42 }
 0x3c5   : > { %v1571_v37 = vpop.f32.mrf.mxu1  ;;  %1741 = vmatprep.mubr.f32.mxu1 %v3703_v13 }
 0x3c6   : > { %v1606_v53 = vmul.f32 %v2338_v31, %v1571_v37 }
 0x3c7   : > { %v1573_v9 = vpop.f32.mrf.mxu1 }
 0x3c8   : > { %1742 = vmatmul.mubr.f32.gmra.mxu1 %v1606_v53 }
 0x3c9   : > { %v1576_v60 = vpop.f32.mrf.mxu1  ;;  %1747 = vmatprep.mubr.f32.mxu1 %v3703_v13 }
 0x3ca   : > { %v1607_v8 = vmul.f32 %v2339_v59, %v1576_v60 }
 0x3cb   : > { %v1578_v26 = vpop.f32.mrf.mxu1 }
 0x3cc   : > { %1748 = vmatmul.mubr.f32.gmra.mxu1 %v1607_v8 }
 0x3cd   : > { %v1581_v2 = vpop.f32.mrf.mxu1  ;;  %1753 = vmatprep.mubr.f32.mxu1 %v3703_v13 }
 0x3ce   : > { %v1608_v10 = vmul.f32 %v2340_v38, %v1581_v2 }
 0x3cf   : > { %v1583_v29 = vpop.f32.mrf.mxu1 }
 0x3d0   : > { %1754 = vmatmul.mubr.f32.gmra.mxu1 %v1608_v10 }
 0x3d1   : > { %v1586_v11 = vpop.f32.mrf.mxu1  ;;  %1759 = vmatprep.mubr.f32.mxu1 %v3703_v13 }
 0x3d2   : > { %v1609_v52 = vmul.f32 %v2341_v17, %v1586_v11 }
 0x3d3   : > { %v1588_v49 = vpop.f32.mrf.mxu1 }
 0x3d4   : > { %1760 = vmatmul.mubr.f32.gmra.mxu1 %v1609_v52  ;;  %v1892_v52 = vld [vmem:[%s3599_s5] sm:$0xf] }
 0x3d5   : > { %v1591_v51 = vpop.f32.mrf.mxu1  ;;  %1765 = vmatprep.mubr.f32.mxu1 %v3703_v13  ;;  %v1900_v49 = vld [vmem:[%s3600_s6] sm:$0xf] }
 0x3d6   : > { %v1610_v21 = vmul.f32 %v2342_v46, %v1591_v51 }
 0x3d7   : > { %v1593_v27 = vpop.f32.mrf.mxu1 }
 0x3d8   : > { %1766 = vmatmul.mubr.f32.gmra.mxu1 %v1610_v21 }
 0x419   : > { %v1777_v48 = vpop.permute.xlu0 %1776 }
 0x45c   : > { %v3544_v34 = vpop.f32.mrf.mxu1 }
 0x45e   : > { %v1679_v15 = vpop.f32.mrf.mxu1 }
 0x460   : > { %v1683_v25 = vpop.f32.mrf.mxu1 }
 0x462   : > { %v1685_v13 = vpop.f32.mrf.mxu1 }
 0x464   : > { %v1689_v55 = vpop.f32.mrf.mxu1 }
 0x466   : > { %v1691_v32 = vpop.f32.mrf.mxu1 }
 0x468   : > { %v1695_v1 = vpop.f32.mrf.mxu1 }
 0x46a   : > { %v1697_v18 = vpop.f32.mrf.mxu1 }
 0x46c   : > { %v1701_v50 = vpop.f32.mrf.mxu1 }
 0x46e   : > { %v1703_v54 = vpop.f32.mrf.mxu1 }
 0x470   : > { %v1707_v24 = vpop.f32.mrf.mxu1 }
 0x472   : > { %v1709_v44 = vpop.f32.mrf.mxu1 }
 0x474   : > { %v1713_v47 = vpop.f32.mrf.mxu1 }
 0x476   : > { %v1715_v33 = vpop.f32.mrf.mxu1 }
 0x478   : > { %v1719_v14 = vpop.f32.mrf.mxu1 }
 0x47a   : > { %v1721_v57 = vpop.f32.mrf.mxu1 }
 0x47c   : > { %v1725_v16 = vpop.f32.mrf.mxu1 }
 0x47e   : > { %v1727_v19 = vpop.f32.mrf.mxu1 }
 0x480   : > { %v1731_v6 = vpop.f32.mrf.mxu1 }
 0x482   : > { %v1733_v4 = vpop.f32.mrf.mxu1 }
 0x484   : > { %v1737_v30 = vpop.f32.mrf.mxu1 }
 0x486   : > { %v1739_v58 = vpop.f32.mrf.mxu1 }
 0x488   : > { %v1743_v62 = vpop.f32.mrf.mxu1 }
 0x48a   : > { %v1745_v20 = vpop.f32.mrf.mxu1 }
 0x48c   : > { %v1749_v36 = vpop.f32.mrf.mxu1 }
 0x48e   : > { %v1751_v35 = vpop.f32.mrf.mxu1 }
 0x490   : > { %v1755_v45 = vpop.f32.mrf.mxu1 }
 0x492   : > { %v1757_v5 = vpop.f32.mrf.mxu1 }
 0x494   : > { %v1761_v0 = vpop.f32.mrf.mxu1 }
 0x496   : > { %v1763_v28 = vpop.f32.mrf.mxu1 }
 0x498   : > { %v1767_v56 = vpop.f32.mrf.mxu1 }
 0x49a   : > { %v1769_v22 = vpop.f32.mrf.mxu1 }
 0x49b   : > { %1779 = vmatprep.subr.mxu0 %v1769_v22 }
 0x49c   : > { %1780 = vmatpush1.msra.mxu0 %v1767_v56 }
 0x49d   : > { %1781 = vmatprep.subr.mxu0 %v1763_v28 }
 0x49e   : > { %1782 = vmatpush1.msra.mxu0 %v1761_v0 }
 0x49f   : > { %1783 = vmatprep.subr.mxu0 %v1757_v5 }
 0x4a0   : > { %1784 = vmatpush1.msra.mxu0 %v1755_v45 }
 0x4a1   : > { %1785 = vmatprep.subr.mxu0 %v1751_v35 }
 0x4a2   : > { %1786 = vmatpush1.msra.mxu0 %v1749_v36 }
 0x4a3   : > { %1787 = vmatprep.subr.mxu0 %v1745_v20 }
 0x4a4   : > { %1788 = vmatpush1.msra.mxu0 %v1743_v62 }
 0x4a5   : > { %1789 = vmatprep.subr.mxu0 %v1739_v58 }
 0x4a6   : > { %1790 = vmatpush1.msra.mxu0 %v1737_v30 }
 0x4a7   : > { %1791 = vmatprep.subr.mxu0 %v1733_v4 }
 0x4a8   : > { %1792 = vmatpush1.msra.mxu0 %v1731_v6 }
 0x4a9   : > { %1793 = vmatprep.subr.mxu0 %v1727_v19 }
 0x4aa   : > { %1794 = vmatpush1.msra.mxu0 %v1725_v16 }
 0x4ab   : > { %1795 = vmatprep.subr.mxu0 %v1721_v57 }
 0x4ac   : > { %1796 = vmatpush1.msra.mxu0 %v1719_v14 }
 0x4ad   : > { %1797 = vmatprep.subr.mxu0 %v1715_v33 }
 0x4ae   : > { %1798 = vmatpush1.msra.mxu0 %v1713_v47 }
 0x4af   : > { %1799 = vmatprep.subr.mxu0 %v1709_v44 }
 0x4b0   : > { %1800 = vmatpush1.msra.mxu0 %v1707_v24 }
 0x4b1   : > { %1801 = vmatprep.subr.mxu0 %v1703_v54 }
 0x4b2   : > { %1802 = vmatpush1.msra.mxu0 %v1701_v50 }
 0x4b3   : > { %1803 = vmatprep.subr.mxu0 %v1697_v18 }
 0x4b4   : > { %1804 = vmatpush1.msra.mxu0 %v1695_v1 }
 0x4b5   : > { %1805 = vmatprep.subr.mxu0 %v1691_v32 }
 0x4b6   : > { %1806 = vmatpush1.msra.mxu0 %v1689_v55 }
 0x4b7   : > { %1807 = vmatprep.subr.mxu0 %v1685_v13 }
 0x4b8   : > { %1808 = vmatpush1.msra.mxu0 %v1683_v25 }
 0x4b9   : > { %1809 = vmatprep.subr.mxu0 %v1679_v15 }
 0x4ba   : > { %1810 = vmatpush1.msra.mxu0 %v3544_v34 }
 0x4bb   : > { %1844 = vmatmul.mubr.f32.vlgmr.msra.gmra.mxu0 %v1772_v7 }
 0x57b   : > { %v1845_v12 = vpop.f32.mrf.mxu0 }
 0x57c   : > { %v1846_v3 = vadd.f32 %v1845_v12, %v1777_v48 }
 0x57d   : > { %v1847_v63 = vpop.f32.mrf.mxu0 }
 0x57e   : > { %v1848_v61 = vadd.f32 %v1847_v63, %v1777_v48  ;;  %v1850_v23 = vsel %vm489_vm0, %v1846_v3, 0.0 }
 0x580   : > { %v1851_v41 = vsel %vm489_vm0, %v1848_v61, 0.0 }
 0x581   : > { %v1852_v42 = vadd.f32 %v1851_v41, %v1850_v23 }
 0x583   : > { %1853 = vadd.xlane.f32.xlu1 %v1852_v42 }
 0x60c   : > { %v1854_v43 = vpop.xlane.xlu1 %1853 }
 0x60d   : > { %v1855_v37 = vrot.slane %v1854_v43, 4 }
 0x60f   : > { %v1856_v31 = vadd.f32 %v1855_v37, %v1854_v43 }
 0x611   : > { %v1857_v53 = vrot.slane %v1856_v31, 2 }
 0x613   : > { %v1858_v9 = vadd.f32 %v1857_v53, %v1856_v31 }
 0x615   : > { %v1859_v60 = vrot.slane %v1858_v9, 1 }
 0x617   : > { %v1860_v59 = vadd.f32 %v1859_v60, %v1858_v9 }
 0x619   : > { %2051 = vpush %v1860_v59 }
 0x64a   : > { %s2052_s14 = spop %2051 }
 0x64b   : > { %s1864_s15 = smul.f32 0.0009765625, %s2052_s14  ;;  %s1928_s14 = sshll.u32 %s271_s13, 4  ;;  %s1929_s14 = int_to_ptr.vmem [resolvable:$true] %s1928_s14 }
 0x64c   : > { %s2343_s19 = scalar_lea.vmem %s1929_s14, 128 }
 0x64d   : > { %v1865_v8 = vstv %s1864_s15  ;;  %p2344_p11 = scmp.ne.s32.totalorder %s1929_s14, %s2343_s19 }
 0x64e   : > { %v1866_v26 = vsub.f32 %v1846_v3, %v1865_v8  ;;  %v1867_v2 = vsub.f32 %v1848_v61, %v1865_v8 }
 0x64f   : > { %p2345_p12 = pnand %p2344_p11, %p2486_p5 }
 0x650   : > { %v1868_v38 = vmul.f32 %v1866_v26, %v1866_v26  ;;  %v1869_v10 = vmul.f32 %v1867_v2, %v1867_v2 }
 0x651   : > { %p2346_p13 = pneg %p2345_p12 }
 0x652   : > { %v1870_v29 = vsel %vm489_vm0, %v1868_v38, 0.0  ;;  %v1871_v11 = vsel %vm489_vm0, %v1869_v10, 0.0 }
 0x653   : > { %v1872_v17 = vadd.f32 %v1871_v11, %v1870_v29 }
 0x655   : > { %1873 = vadd.xlane.f32.xlu1 %v1872_v17 }
 0x666   : > { %1895 = vperm.xlu1 %2099, %v1892_v52  }
 0x66a   : > { %1903 = vperm.xlu1 %2099, %v1900_v49  }
 0x6de   : > { %v1874_v51 = vpop.xlane.xlu1 %1873 }
 0x6df   : > { %v1875_v46 = vrot.slane %v1874_v51, 4 }
 0x6e1   : > { %v1876_v21 = vadd.f32 %v1875_v46, %v1874_v51 }
 0x6e2   : > { %v1896_v13 = vpop.permute.xlu1 %1895 }
 0x6e3   : > { %v1877_v27 = vrot.slane %v1876_v21, 2 }
 0x6e5   : > { %v1878_v39 = vadd.f32 %v1877_v27, %v1876_v21 }
 0x6e6   : > { %v1904_v54 = vpop.permute.xlu1 %1903 }
 0x6e7   : > { %v1879_v40 = vrot.slane %v1878_v39, 1 }
 0x6e9   : > { %v1880_v34 = vadd.f32 %v1879_v40, %v1878_v39 }
 0x6eb   : > { %2053 = vpush %v1880_v34 }
 0x71c   : > { %s2054_s20 = spop %2053 }
 0x71d   : > { %s1884_s21 = smul.f32 0.0009765625, %s2054_s20  ;;  %s2407_s20 = smov [#allocation2]  }
 0x71f   : > { %s1885_s22 = sadd.f32 1e-05, %s1884_s21  ;;  %s2347_s21 = sshll.u32 %s2407_s20, 4  ;;  %s2348_s21 = int_to_ptr.vmem [resolvable:$false] %s2347_s21 }
 0x720   : > { %s2349_s28 = scalar_lea.vmem %s2348_s21, 256  ;;  %p2350_p0 = scmp.lt.s32.totalorder %s1929_s14, %s2348_s21 }
 0x721   : > { %v1886_v15 = vstv %s1885_s22  ;;  %p2351_p1 = scmp.lt.s32.totalorder %s2349_s28, %s2343_s19 }
 0x722   : > { %2325 = vrsqrt.f32 %v1886_v15 }
 0x723   : > { %p2352_p2 = por %p2351_p1, %p2350_p0 }
 0x725   : > { %p2353_p3 = pnand %p2352_p2, %p2346_p13 }
 0x72f   : > { %v2326_v25 = vpop.eup %2325 }
 0x730   : > { %2055 = vpush %v2326_v25 }
 0x761   : > { %s2056_s8 = spop %2055 }
 0x762   : > { %v1889_v55 = vstv %s2056_s8 }
 0x763   : > { %v1890_v32 = vmul.f32 %v1889_v55, %v1866_v26  ;;  %v1891_v1 = vmul.f32 %v1889_v55, %v1867_v2 }
 0x765   : > { %v1898_v18 = vmul.f32 %v1896_v13, %v1890_v32  ;;  %v1899_v50 = vmul.f32 %v1896_v13, %v1891_v1 }
 0x767   : > { %v1906_v24 = vadd.f32 %v1904_v54, %v1898_v18  ;;  %v1907_v44 = vadd.f32 %v1904_v54, %v1899_v50 }
 0x769   : > { %v1910_v47 = vcombine.low %v1906_v24, %v1907_v44 }
 0x76b   : > { %1912 = vst [vmem:[%s271_s13] sm:$0xff] %v1910_v47 }
 0x76c   : > { %2356 = shalt.err (!%p2353_p3)
}
 0x76d   : > { %s2357_s22 = scalar_lea.hbm %s1926_s17, 128  ;;  %s2361_s8 = scalar_lea.hbm %s3601_s7, 256 }
 0x76e   : > { %p2358_p4 = scmp.ne.s32.totalorder %s1926_s17, %s2357_s22  ;;  %p2362_p9 = scmp.lt.s32.totalorder %s1926_s17, %s3601_s7 }
 0x76f   : > { %p2363_p10 = scmp.lt.s32.totalorder %s2361_s8, %s2357_s22 }
 0x770   : > { %p2359_p7 = pnand %p2358_p4, %p2486_p5 }
 0x771   : > { %p2364_p11 = por %p2363_p10, %p2362_p9 }
 0x772   : > { %p2360_p8 = pneg %p2359_p7 }
 0x774   : > { %p2365_p12 = pnand %p2364_p11, %p2360_p8 }
 0x776   : > { %2368 = shalt.err (!%p2365_p12)
}
 0x777   : > { %2057 = dma.vmem_to_hbm [thread:$0]  (%p2486_p5), %s1929_s14, 128, %s1926_s17, %s1914_s18  }
 0x778 PF: > { %p2063_p13 = scmp.ge.s32.totalorder %s2403_s27, 2  ;;  %s1940_s15 = sand.u32 1, %s2391_s24  }
 0x779   : > { %s1941_s16 = scalar_lea.sflag [#allocation3], %s1940_s15 }
 0x77a   : > { %p2060_p0 = pnand %p2063_p13, %p2490_p6 }
 0x77c   : > { %p2061_p1 = pneg %p2060_p0 }
 0x77e   : > { %2386 = dma.done.wait (%p2061_p1), %s1941_s16, 128  }
 0x77f   : > { %2388 = vsyncadd (%p2061_p1), %s1941_s16, 4294967168  ;;  %p17_p2 = scmp.ge.s32.totalorder %s2473_s30, 4   ;;  %s3704_s24 = smov %s2395_s25 }
 0x780   : > { %s3705_s25 = smov %s2399_s26  ;;  %s3706_s26 = smov %s2484_s10 }
 0x781   : > { %s3707_s27 = smov %s2473_s30  ;;  %19 = sbr.rel (!%p17_p2) target bundleno = 3 (0x3), region = 83 }
 0x786   :  { %1946 = vsyncpa [#allocation3], 1 }
 0x787   :  { %1948 = vsyncpa [#allocation3 + $0x1], 1 }

</bundles_post_ra>
